<compile_context>
chip_gen: v7x
topology: tpu7x:2x2x1
jax: 0.10.0
libtpu: 0.0.40
codegen_flags: <defaults>
</compile_context>

<pallas_src>
import functools
import math

import jax
import jax.numpy as jnp
from jax import lax
from jax.experimental import pallas as pl
from jax.experimental.pallas import tpu as pltpu

_LN_EPS = 1e-5       # nn.LayerNorm default
_NEG_INF = -1e30     # finite "minus infinity" for the causal mask / online softmax


# ----------------------------------------------------------------------------- helpers
def _tpu_vmem_bytes():
    try:
        return int(pltpu.get_tpu_info().vmem_capacity_bytes)
    except Exception:
        return 128 * 1024 * 1024   # v5e / v6e


def _round_up(x, m):
    return ((x + m - 1) // m) * m


def _pick_row_tile(m, target):
    """Row tile (second-to-last dim): full extent for small M, otherwise a multiple of
    256 (keeps the 256x256 MXUs on v6e/v7x full), falling back to a multiple of 8."""
    if m <= target:
        return m
    if target >= 256:
        return (target // 256) * 256
    return max(8, (target // 8) * 8)


def _pad_rows(x2d, tm):
    m = x2d.shape[0]
    m_pad = _round_up(m, tm)
    if m_pad != m:
        x2d = jnp.pad(x2d, ((0, m_pad - m), (0, 0)))
    return x2d, m


def _pick_head_group(num_heads, head_dim, target_cols=256):
    """Heads per grid step so the fused QKV / out-proj matmuls span ~target_cols."""
    g = max(1, min(num_heads, target_cols // max(head_dim, 1)))
    while num_heads % g:
        g -= 1
    return g


def _pick_ff_chunk(d_ff, d_model, compute_itemsize, out_itemsize, vmem_bytes, tm_target):
    """Largest d_ff chunk (multiple of 128) whose double-buffered W1/W2 chunks plus the
    row-tile buffers fit ~70% of physical VMEM.  d_ff is zero-padded up to a multiple of
    the chunk (zero columns of W1 / zero rows of W2 contribute exactly 0)."""
    if d_ff <= 128:
        return d_ff, d_ff                              # full extent, no padding
    budget = int(0.7 * vmem_bytes)
    fixed = (2 * tm_target * d_model * compute_itemsize    # x row tile (double buffered)
             + 2 * tm_target * d_model * out_itemsize      # output tile (double buffered)
             + tm_target * d_model * 4)                    # fp32 accumulator
    per_tkf = (2 * 2 * d_model * compute_itemsize          # W1 + W2 chunks, double buffered
               + tm_target * 4                             # fp32 fc1 activation column
               + 2 * 4)                                    # b1 chunk (fp32, double buffered)
    tkf = (budget - fixed) // per_tkf
    tkf = max(128, (min(tkf, d_ff, 2048) // 128) * 128)
    return tkf, _round_up(d_ff, tkf)


# ----------------------------------------------------------------- parameter preparation
def prepare_decoder_params(params, *, num_heads, compute_dtype=jnp.bfloat16,
                           head_group_size=None, ffn_chunk=None, kv_chunk=None):
    """Pack / pad / pre-cast all DecoderLayer weights exactly once.

    compute_dtype (default bf16) is the MXU operand dtype; accumulation, biases,
    softmax, residuals and LayerNorm statistics always stay in fp32.
    """
    cdt = jnp.dtype(compute_dtype)
    d_model = params["wq"].shape[0]
    d_ff = params["w1"].shape[1]
    head_dim = d_model // num_heads

    G = head_group_size if head_group_size is not None else _pick_head_group(num_heads, head_dim)
    assert num_heads % G == 0
    ng = num_heads // G
    ghd = G * head_dim

    def grp_w(w):                                   # (D, D) -> (ng, D, G*hd)
        return w.reshape(d_model, ng, ghd).transpose(1, 0, 2)

    def grp_b(b):                                   # (D,) -> (ng, 1, G*hd)
        return b.reshape(ng, 1, ghd)

    wqkv_g = jnp.concatenate(
        [grp_w(params["wq"]), grp_w(params["wk"]), grp_w(params["wv"])],
        axis=-1).astype(cdt)                                           # (ng, D, 3*G*hd)
    bqkv_g = jnp.concatenate(
        [grp_b(params["bq"]), grp_b(params["bk"]), grp_b(params["bv"])],
        axis=-1).astype(jnp.float32)                                   # (ng, 1, 3*G*hd)
    wo_g = params["wo"].reshape(ng, ghd, d_model).astype(cdt)          # (ng, G*hd, D)

    vmem_bytes = _tpu_vmem_bytes()
    tm_target = 512 if vmem_bytes > (64 << 20) else 256               # v5e/v6e vs v7x

    if ffn_chunk is None:
        tkf, d_ff_pad = _pick_ff_chunk(d_ff, d_model, cdt.itemsize, 4,
                                       vmem_bytes, tm_target)
    else:
        tkf = int(ffn_chunk)
        if d_ff <= tkf:
            tkf, d_ff_pad = d_ff, d_ff
        else:
            d_ff_pad = _round_up(d_ff, tkf)

    pad = d_ff_pad - d_ff
    w1, b1, w2 = params["w1"], params["b1"], params["w2"]
    if pad:
        w1 = jnp.pad(w1, ((0, 0), (0, pad)))
        b1 = jnp.pad(b1, ((0, pad),))
        w2 = jnp.pad(w2, ((0, pad), (0, 0)))

    return dict(
        compute_dtype=cdt, num_heads=num_heads, head_dim=head_dim,
        head_group_size=G, num_head_groups=ng,
        wqkv_g=wqkv_g, bqkv_g=bqkv_g, wo_g=wo_g,
        bo=params["bo"].reshape(1, d_model).astype(jnp.float32),
        ln1_g=params["ln1_g"].reshape(1, d_model).astype(jnp.float32),
        ln1_b=params["ln1_b"].reshape(1, d_model).astype(jnp.float32),
        w1=w1.astype(cdt), b1=b1.reshape(1, d_ff_pad).astype(jnp.float32),
        w2=w2.astype(cdt), b2=params["b2"].reshape(1, d_model).astype(jnp.float32),
        ln2_g=params["ln2_g"].reshape(1, d_model).astype(jnp.float32),
        ln2_b=params["ln2_b"].reshape(1, d_model).astype(jnp.float32),
        ffn_chunk=tkf, d_ff_pad=d_ff_pad,
        row_tile_target=tm_target, kv_chunk=kv_chunk, vmem_bytes=vmem_bytes,
    )


# ----------------------------------------- fused masked MHSA + residual + LayerNorm1 kernel
def _mhsa_ln1_kernel(x_ref, wqkv_ref, bqkv_ref, wo_ref, bo_ref, g_ref, b_ref,
                     o_ref, acc_ref, *, group_size, head_dim, kv_chunk, approx_recip):
    grp = pl.program_id(1)

    @pl.when(grp == 0)
    def _init():
        acc_ref[...] = jnp.zeros_like(acc_ref)

    x = x_ref[0]                                       # (T, D), compute dtype
    t = x.shape[0]
    cdt = x.dtype
    ghd = group_size * head_dim
    scale = 1.0 / math.sqrt(head_dim)

    # Fused QKV projection for the whole head group: N = 3*G*hd keeps the MXU full.
    qkv = jnp.dot(x, wqkv_ref[0], preferred_element_type=jnp.float32) + bqkv_ref[0]
    # Fold 1/sqrt(hd) into Q; cast operands back to the compute dtype so the score and
    # context matmuls run the native (bf16) MXU path with fp32 accumulation.
    q_all = (qkv[:, :ghd] * scale).astype(cdt)
    k_all = qkv[:, ghd:2 * ghd].astype(cdt)
    v_all = qkv[:, 2 * ghd:].astype(cdt)

    row = lax.broadcasted_iota(jnp.int32, (t, 1), 0)
    n_chunks = (t + kv_chunk - 1) // kv_chunk          # static

    ctx_heads = []
    for h in range(group_size):                        # static, small
        q = q_all[:, h * head_dim:(h + 1) * head_dim]  # (T, hd)
        k = k_all[:, h * head_dim:(h + 1) * head_dim]
        v = v_all[:, h * head_dim:(h + 1) * head_dim]

        m_i = jnp.full((t, 1), _NEG_INF, jnp.float32)
        l_i = jnp.zeros((t, 1), jnp.float32)
        acc = jnp.zeros((t, head_dim), jnp.float32)
        # Flash-style K/V streaming: score tile is (T, kv_chunk), never (T, T).
        for ci in range(n_chunks):                     # static unroll
            c0 = ci * kv_chunk
            kc = k[c0:c0 + kv_chunk]
            vc = v[c0:c0 + kv_chunk]
            s = lax.dot_general(q, kc, (((1,), (1,)), ((), ())),
                                preferred_element_type=jnp.float32)      # (T, tk)
            col = c0 + lax.broadcasted_iota(jnp.int32, (t, kc.shape[0]), 1)
            s = jnp.where(row >= col, s, _NEG_INF)
            m_new = jnp.maximum(m_i, jnp.max(s, axis=-1, keepdims=True))
            alpha = jnp.exp(m_i - m_new)
            p = jnp.exp(s - m_new)
            l_i = alpha * l_i + jnp.sum(p, axis=-1, keepdims=True)
            acc = alpha * acc + jnp.dot(p.astype(cdt), vc,
                                        preferred_element_type=jnp.float32)
            m_i = m_new
        # Deferred softmax normalization on the (T, hd) context, not the (T, T) probs.
        ctx_heads.append(acc * pl.reciprocal(l_i, approx=approx_recip))

    ctx_g = jnp.concatenate(ctx_heads, axis=-1) if group_size > 1 else ctx_heads[0]

    # Per-group slice of the output projection (K = G*hd), accumulated across groups.
    acc_ref[...] += jnp.dot(ctx_g.astype(cdt), wo_ref[0],
                            preferred_element_type=jnp.float32)

    @pl.when(grp == pl.num_programs(1) - 1)
    def _finalize():
        # Fused residual add + LayerNorm1 (x is already resident in VMEM).
        s = acc_ref[...] + bo_ref[...] + x_ref[0].astype(jnp.float32)
        mean = jnp.mean(s, axis=-1, keepdims=True)
        xc = s - mean
        var = jnp.mean(xc * xc, axis=-1, keepdims=True)
        inv = lax.rsqrt(var + _LN_EPS)
        o_ref[0] = (xc * inv * g_ref[...] + b_ref[...]).astype(o_ref.dtype)


def masked_mhsa_ln1(x, pp, *, kv_chunk=None):
    """h1 = LayerNorm1(x + MHSA(x)). x: (B, T, D) in compute dtype; returns same."""
    B, T, D = x.shape
    cdt = pp["compute_dtype"]
    G, ng, hd = pp["head_group_size"], pp["num_head_groups"], pp["head_dim"]
    ghd = G * hd
    if kv_chunk is None:
        kv_chunk = pp["kv_chunk"] if pp["kv_chunk"] else min(T, 512)
    kv_chunk = min(int(kv_chunk), T)

    approx = bool(cdt != jnp.dtype(jnp.float32))
    kernel = functools.partial(_mhsa_ln1_kernel, group_size=G, head_dim=hd,
                               kv_chunk=kv_chunk, approx_recip=approx)

    itemsize = cdt.itemsize
    est = (2 * T * D * itemsize               # x (double buffered)
           + 2 * D * 3 * ghd * itemsize       # fused QKV weight group
           + 2 * ghd * D * itemsize           # Wo group
           + 2 * T * D * itemsize             # output tile
           + T * D * 4                        # fp32 accumulator
           + T * 3 * ghd * 4                  # fp32 qkv activations
           + 3 * T * ghd * itemsize           # q/k/v compute-dtype copies
           + 2 * T * kv_chunk * 4             # score + prob chunk
           + 2 * T * ghd * 4                  # flash accumulators + group context
           + 16 * D * 4)                      # biases / LN params
    vmem_limit = min(max(2 * est + (4 << 20), 32 << 20),
                     pp["vmem_bytes"] - (8 << 20))

    return pl.pallas_call(
        kernel,
        out_shape=jax.ShapeDtypeStruct((B, T, D), cdt),
        grid_spec=pltpu.PrefetchScalarGridSpec(
            num_scalar_prefetch=0,
            grid=(B, ng),
            in_specs=[
                pl.BlockSpec((1, T, D), lambda b, g: (b, 0, 0)),           # x (resident over g)
                pl.BlockSpec((1, D, 3 * ghd), lambda b, g: (g, 0, 0)),     # fused QKV weights
                pl.BlockSpec((1, 1, 3 * ghd), lambda b, g: (g, 0, 0)),     # fused QKV bias
                pl.BlockSpec((1, ghd, D), lambda b, g: (g, 0, 0)),         # Wo rows for the group
                pl.BlockSpec((1, D), lambda b, g: (0, 0)),                 # bo
                pl.BlockSpec((1, D), lambda b, g: (0, 0)),                 # ln1 gamma
                pl.BlockSpec((1, D), lambda b, g: (0, 0)),                 # ln1 beta
            ],
            out_specs=pl.BlockSpec((1, T, D), lambda b, g: (b, 0, 0)),
            scratch_shapes=[pltpu.VMEM((T, D), jnp.float32)],
        ),
        compiler_params=pltpu.CompilerParams(
            dimension_semantics=("parallel", "arbitrary"),
            vmem_limit_bytes=vmem_limit),
    )(x, pp["wqkv_g"], pp["bqkv_g"], pp["wo_g"], pp["bo"], pp["ln1_g"], pp["ln1_b"])


# ------------------------------------------------ fused FFN + residual + LayerNorm2 kernel
def _ffn_ln2_kernel(x_ref, w1_ref, b1_ref, w2_ref, b2_ref, g_ref, b_ref, o_ref, acc_ref):
    k = pl.program_id(1)

    @pl.when(k == 0)
    def _init():
        acc_ref[...] = jnp.zeros_like(acc_ref)

    # fc1 chunk on the MXU (fp32 accumulation), bias + ReLU in fp32 on the VPU.
    h = jnp.dot(x_ref[...], w1_ref[...], preferred_element_type=jnp.float32)
    h = jnp.maximum(h + b1_ref[...], 0.0)
    # Partial fc2 contribution into the resident fp32 accumulator.
    acc_ref[...] += jnp.dot(h.astype(w2_ref.dtype), w2_ref[...],
                            preferred_element_type=jnp.float32)

    @pl.when(k == pl.num_programs(1) - 1)
    def _finalize():
        # b2 once + residual (x_ref holds h1) + LayerNorm2, all fused.
        s = acc_ref[...] + b2_ref[...] + x_ref[...].astype(jnp.float32)
        mean = jnp.mean(s, axis=-1, keepdims=True)
        xc = s - mean
        var = jnp.mean(xc * xc, axis=-1, keepdims=True)
        inv = lax.rsqrt(var + _LN_EPS)
        o_ref[...] = (xc * inv * g_ref[...] + b_ref[...]).astype(o_ref.dtype)


def ffn_ln2(h1_2d, pp, out_dtype, *, tm=None):
    """out = LayerNorm2(h1 + FFN(h1)). h1_2d: [M, d_model] in compute dtype."""
    m_in, d_model = h1_2d.shape
    cdt = pp["compute_dtype"]
    d_ff_pad, tkf = pp["d_ff_pad"], pp["ffn_chunk"]

    tm = _pick_row_tile(m_in, tm if tm is not None else pp["row_tile_target"])
    h1_2d, m = _pad_rows(h1_2d, tm)
    m_pad = h1_2d.shape[0]

    itemsize = cdt.itemsize
    out_item = jnp.dtype(out_dtype).itemsize
    est = (2 * tm * d_model * itemsize          # h1 row tile
           + 2 * d_model * tkf * itemsize       # W1 chunk
           + 2 * tkf * d_model * itemsize       # W2 chunk
           + 2 * (tkf + 3 * d_model) * 4        # bias / LN chunks
           + 2 * tm * d_model * out_item        # output tile
           + tm * tkf * 4                       # fc1 activation
           + tm * d_model * 4)                  # accumulator
    vmem_limit = min(max(2 * est + (4 << 20), 32 << 20),
                     pp["vmem_bytes"] - (8 << 20))

    out = pl.pallas_call(
        _ffn_ln2_kernel,
        out_shape=jax.ShapeDtypeStruct((m_pad, d_model), out_dtype),
        grid_spec=pltpu.PrefetchScalarGridSpec(
            num_scalar_prefetch=0,
            grid=(m_pad // tm, d_ff_pad // tkf),
            in_specs=[
                pl.BlockSpec((tm, d_model), lambda i, k: (i, 0)),    # h1 tile (also residual)
                pl.BlockSpec((d_model, tkf), lambda i, k: (0, k)),   # W1 chunk
                pl.BlockSpec((1, tkf), lambda i, k: (0, k)),         # b1 chunk
                pl.BlockSpec((tkf, d_model), lambda i, k: (k, 0)),   # W2 chunk
                pl.BlockSpec((1, d_model), lambda i, k: (0, 0)),     # b2
                pl.BlockSpec((1, d_model), lambda i, k: (0, 0)),     # ln2 gamma
                pl.BlockSpec((1, d_model), lambda i, k: (0, 0)),     # ln2 beta
            ],
            out_specs=pl.BlockSpec((tm, d_model), lambda i, k: (i, 0)),
            scratch_shapes=[pltpu.VMEM((tm, d_model), jnp.float32)],
        ),
        compiler_params=pltpu.CompilerParams(
            dimension_semantics=("parallel", "arbitrary"),
            vmem_limit_bytes=vmem_limit),
    )(h1_2d, pp["w1"], pp["b1"], pp["w2"], pp["b2"], pp["ln2_g"], pp["ln2_b"])
    return out[:m]


# --------------------------------------------------------------------------- decoder layer
def decoder_layer(x, prepared, *, tm=None, kv_chunk=None):
    """Forward of DecoderLayer: LN1(x + MHSA(x)) -> LN2(h1 + FFN(h1))."""
    orig_dtype = x.dtype
    cdt = prepared["compute_dtype"]
    B, T, D = x.shape
    h1 = masked_mhsa_ln1(x.astype(cdt), prepared, kv_chunk=kv_chunk)    # (B, T, D) cdt
    out = ffn_ln2(h1.reshape(B * T, D), prepared, orig_dtype, tm=tm)    # (M, D) orig dtype
    return out.reshape(B, T, D)


# ------------------------------------------------------------------------ pure-JAX reference
def _reference_decoder_layer(x, p, *, num_heads):
    hp = jax.lax.Precision.HIGHEST
    B, T, D = x.shape
    hd = D // num_heads

    def dot(a, b):
        return jnp.dot(a, b, precision=hp)

    q = dot(x, p["wq"]) + p["bq"]
    k = dot(x, p["wk"]) + p["bk"]
    v = dot(x, p["wv"]) + p["bv"]

    def split(a):  # (B, T, D) -> (B, H, T, hd)
        return a.reshape(B, T, num_heads, hd).transpose(0, 2, 1, 3)

    q, k, v = split(q), split(k), split(v)
    s = jnp.einsum("bhqd,bhkd->bhqk", q, k, precision=hp) / (hd ** 0.5)
    mask = jnp.tril(jnp.ones((T, T), dtype=bool))
    s = jnp.where(mask[None, None], s, -jnp.inf)
    w = jax.nn.softmax(s, axis=-1)
    ctx = jnp.einsum("bhqk,bhkd->bhqd", w, v, precision=hp)
    ctx = ctx.transpose(0, 2, 1, 3).reshape(B, T, D)
    attn = dot(ctx, p["wo"]) + p["bo"]

    def ln(a, g, b):
        mu = a.mean(-1, keepdims=True)
        var = ((a - mu) ** 2).mean(-1, keepdims=True)
        return (a - mu) / jnp.sqrt(var + _LN_EPS) * g + b

    h1 = ln(x + attn, p["ln1_g"], p["ln1_b"])
    ffn = dot(jnp.maximum(dot(h1, p["w1"]) + p["b1"], 0.0), p["w2"]) + p["b2"]
    return ln(h1 + ffn, p["ln2_g"], p["ln2_b"])


if __name__ == "__main__":
    batch, seq, d_model, d_ff, num_heads = 2, 16, 32, 192, 4

    key = jax.random.PRNGKey(0)
    keys = jax.random.split(key, 14)
    scale = 0.05

    def _w(k, shape):
        return scale * jax.random.normal(k, shape, dtype=jnp.float32)

    x = jax.random.normal(keys[0], (batch, seq, d_model), dtype=jnp.float32)

    params = {
        # qkv_proj (nn.Linear(d_model, 3*d_model)) pre-transposed and split into Q/K/V.
        "wq": _w(keys[1], (d_model, d_model)),
        "wk": _w(keys[2], (d_model, d_model)),
        "wv": _w(keys[3], (d_model, d_model)),
        "bq": _w(keys[4], (d_model,)),
        "bk": _w(keys[5], (d_model,)),
        "bv": _w(keys[6], (d_model,)),
        # out_proj
        "wo": _w(keys[7], (d_model, d_model)),
        "bo": _w(keys[8], (d_model,)),
        # LayerNorms (PyTorch defaults: weight=1, bias=0)
        "ln1_g": jnp.ones((d_model,), jnp.float32),
        "ln1_b": jnp.zeros((d_model,), jnp.float32),
        "ln2_g": jnp.ones((d_model,), jnp.float32),
        "ln2_b": jnp.zeros((d_model,), jnp.float32),
        # FFN (pre-transposed)
        "w1": _w(keys[9], (d_model, d_ff)),
        "b1": _w(keys[10], (d_ff,)),
        "w2": _w(keys[11], (d_ff, d_model)),
        "b2": _w(keys[12], (d_model,)),
    }

    ref = _reference_decoder_layer(x, params, num_heads=num_heads)

    # fp32 compute path (tight check). The small overrides exercise every multi-step
    # path: 2 head groups (out-proj accumulation), 2 KV chunks (online softmax),
    # d_ff 192 zero-padded to 256 with 2 d_ff chunks, and a 4-step FFN row grid.
    pp32 = prepare_decoder_params(params, num_heads=num_heads,
                                  compute_dtype=jnp.float32,
                                  head_group_size=2, ffn_chunk=128, kv_chunk=8)
    out = jax.block_until_ready(decoder_layer(x, pp32, tm=8))
    assert out.shape == (batch, seq, d_model)
    max_err = float(jnp.max(jnp.abs(out - ref)))
    assert jnp.allclose(out, ref, atol=5e-4, rtol=5e-4), max_err

    # Default path: bf16 MXU operands, fp32 accumulation, auto-picked tiles — loose check.
    pp_bf16 = prepare_decoder_params(params, num_heads=num_heads)
    out_bf16 = jax.block_until_ready(decoder_layer(x, pp_bf16))
    assert out_bf16.shape == (batch, seq, d_model)
    assert bool(jnp.all(jnp.isfinite(out_bf16)))
    assert jnp.allclose(out_bf16, ref, atol=2e-1, rtol=2e-1)

    print("KERNEL_OK")
</pallas_src>

<mosaic_0001>
module attributes {stable_mosaic.version = 11 : i64} {
  func.func @_mhsa_ln1_kernel(%arg0: i32, %arg1: i32, %arg2: memref<1x16x32xf32, #tpu.memory_space<vmem>>, %arg3: memref<1x32x48xf32, #tpu.memory_space<vmem>>, %arg4: memref<1x1x48xf32, #tpu.memory_space<vmem>>, %arg5: memref<1x16x32xf32, #tpu.memory_space<vmem>>, %arg6: memref<1x32xf32, #tpu.memory_space<vmem>>, %arg7: memref<1x32xf32, #tpu.memory_space<vmem>>, %arg8: memref<1x32xf32, #tpu.memory_space<vmem>>, %arg9: memref<1x16x32xf32, #tpu.memory_space<vmem>>, %arg10: memref<16x32xf32, #tpu.memory_space<vmem>>) attributes {dimension_semantics = [#tpu.dimension_semantics<parallel>, #tpu.dimension_semantics<arbitrary>], iteration_bounds = array<i64: 2, 2>, scalar_prefetch = 0 : i64, scratch_operands = 1 : i64, tpu.core_type = #tpu.core_type<tc>, window_params = [{transform_indices = @transform_0, window_bounds = array<i64: 1, 16, 32>}, {transform_indices = @transform_1, window_bounds = array<i64: 1, 32, 48>}, {transform_indices = @transform_2, window_bounds = array<i64: 1, 1, 48>}, {transform_indices = @transform_3, window_bounds = array<i64: 1, 16, 32>}, {pipeline_mode = #tpu.pipeline_mode<synchronous>, transform_indices = @transform_4, window_bounds = array<i64: 1, 32>}, {pipeline_mode = #tpu.pipeline_mode<synchronous>, transform_indices = @transform_5, window_bounds = array<i64: 1, 32>}, {pipeline_mode = #tpu.pipeline_mode<synchronous>, transform_indices = @transform_6, window_bounds = array<i64: 1, 32>}, {transform_indices = @transform_7, window_bounds = array<i64: 1, 16, 32>}]} {
    %c0_i32 = arith.constant 0 : i32
    %0 = arith.cmpi eq, %arg1, %c0_i32 : i32
    %1 = arith.extui %0 : i1 to i32
    %c0_i32_0 = arith.constant 0 : i32
    %2 = arith.cmpi ne, %1, %c0_i32_0 : i32
    scf.if %2 {
      %cst_48 = arith.constant 0.000000e+00 : f32
      %150 = vector.broadcast %cst_48 : f32 to vector<16x32xf32>
      %c0_49 = arith.constant 0 : index
      %c0_50 = arith.constant 0 : index
      %151 = vector.load %arg10[%c0_49, %c0_50] : memref<16x32xf32, #tpu.memory_space<vmem>>, vector<16x32xf32>
      tpu.vector_store %arg10[%c0_49, %c0_50], %150 {strides = array<i32>} : memref<16x32xf32, #tpu.memory_space<vmem>>, vector<16x32xf32>,
    } else {
    }
    %c0 = arith.constant 0 : index
    %c0_1 = arith.constant 0 : index
    %c0_2 = arith.constant 0 : index
    %3 = vector.load %arg2[%c0, %c0_1, %c0_2] : memref<1x16x32xf32, #tpu.memory_space<vmem>>, vector<1x16x32xf32>
    %4 = vector.shape_cast %3 : vector<1x16x32xf32> to vector<16x32xf32>
    %c0_3 = arith.constant 0 : index
    %c0_4 = arith.constant 0 : index
    %c0_5 = arith.constant 0 : index
    %5 = vector.load %arg3[%c0_3, %c0_4, %c0_5] : memref<1x32x48xf32, #tpu.memory_space<vmem>>, vector<1x32x48xf32>
    %6 = vector.shape_cast %5 : vector<1x32x48xf32> to vector<32x48xf32>
    %cst = arith.constant dense<0.000000e+00> : vector<16x48xf32>
    %7 = tpu.matmul %4, %6, %cst {dimension_numbers = #tpu.dot_dimension_numbers<[1], [0], [0], [1], [0, 0, 1, 1], [], []>} : vector<16x32xf32>, vector<32x48xf32>, vector<16x48xf32> -> vector<16x48xf32>
    %c0_6 = arith.constant 0 : index
    %c0_7 = arith.constant 0 : index
    %c0_8 = arith.constant 0 : index
    %8 = vector.load %arg4[%c0_6, %c0_7, %c0_8] : memref<1x1x48xf32, #tpu.memory_space<vmem>>, vector<1x1x48xf32>
    %9 = vector.shape_cast %8 : vector<1x1x48xf32> to vector<1x48xf32>
    %10 = vector.broadcast %9 : vector<1x48xf32> to vector<16x48xf32>
    %11 = arith.addf %7, %10 : vector<16x48xf32>
    %12 = vector.extract_strided_slice %11 {offsets = [0, 0], sizes = [16, 16], strides = [1, 1]} : vector<16x48xf32> to vector<16x16xf32>
    %cst_9 = arith.constant 0.353553385 : f32
    %13 = vector.broadcast %cst_9 : f32 to vector<16x16xf32>
    %14 = arith.mulf %12, %13 : vector<16x16xf32>
    %15 = vector.extract_strided_slice %11 {offsets = [0, 16], sizes = [16, 16], strides = [1, 1]} : vector<16x48xf32> to vector<16x16xf32>
    %16 = vector.extract_strided_slice %11 {offsets = [0, 32], sizes = [16, 16], strides = [1, 1]} : vector<16x48xf32> to vector<16x16xf32>
    %17 = tpu.iota {dimensions = array<i32: 0>} : vector<16x1xi32>
    %18 = vector.extract_strided_slice %14 {offsets = [0, 0], sizes = [16, 8], strides = [1, 1]} : vector<16x16xf32> to vector<16x8xf32>
    %19 = vector.extract_strided_slice %15 {offsets = [0, 0], sizes = [16, 8], strides = [1, 1]} : vector<16x16xf32> to vector<16x8xf32>
    %20 = vector.extract_strided_slice %16 {offsets = [0, 0], sizes = [16, 8], strides = [1, 1]} : vector<16x16xf32> to vector<16x8xf32>
    %cst_10 = arith.constant -1.000000e+30 : f32
    %21 = vector.broadcast %cst_10 : f32 to vector<16x1xf32>
    %cst_11 = arith.constant 0.000000e+00 : f32
    %22 = vector.broadcast %cst_11 : f32 to vector<16x1xf32>
    %cst_12 = arith.constant 0.000000e+00 : f32
    %23 = vector.broadcast %cst_12 : f32 to vector<16x8xf32>
    %24 = vector.extract_strided_slice %19 {offsets = [0, 0], sizes = [8, 8], strides = [1, 1]} : vector<16x8xf32> to vector<8x8xf32>
    %25 = vector.extract_strided_slice %20 {offsets = [0, 0], sizes = [8, 8], strides = [1, 1]} : vector<16x8xf32> to vector<8x8xf32>
    %cst_13 = arith.constant dense<0.000000e+00> : vector<16x8xf32>
    %26 = tpu.matmul %18, %24, %cst_13 {dimension_numbers = #tpu.dot_dimension_numbers<[1], [1], [0], [0], [0, 0, 1, 0], [], []>} : vector<16x8xf32>, vector<8x8xf32>, vector<16x8xf32> -> vector<16x8xf32>
    %27 = tpu.iota {dimensions = array<i32: 1>} : vector<16x8xi32>
    %c0_i32_14 = arith.constant 0 : i32
    %28 = vector.broadcast %c0_i32_14 : i32 to vector<16x8xi32>
    %29 = arith.addi %28, %27 : vector<16x8xi32>
    %30 = vector.broadcast %17 : vector<16x1xi32> to vector<16x8xi32>
    %31 = arith.cmpi sge, %30, %29 : vector<16x8xi32>
    %cst_15 = arith.constant -1.000000e+30 : f32
    %32 = vector.broadcast %cst_15 : f32 to vector<16x8xf32>
    %33 = arith.select %31, %26, %32 : vector<16x8xi1>, vector<16x8xf32>
    %cst_16 = arith.constant dense<0xFF800000> : vector<16xf32>
    %34 = vector.multi_reduction <maximumf>, %33, %cst_16 [1] : vector<16x8xf32> to vector<16xf32>
    %35 = vector.shape_cast %34 : vector<16xf32> to vector<16x1xf32>
    %36 = arith.maximumf %21, %35 : vector<16x1xf32>
    %37 = arith.subf %21, %36 : vector<16x1xf32>
    %38 = math.exp %37 : vector<16x1xf32>
    %39 = vector.broadcast %36 : vector<16x1xf32> to vector<16x8xf32>
    %40 = arith.subf %33, %39 : vector<16x8xf32>
    %41 = math.exp %40 : vector<16x8xf32>
    %42 = arith.mulf %38, %22 : vector<16x1xf32>
    %cst_17 = arith.constant dense<0.000000e+00> : vector<16xf32>
    %43 = vector.multi_reduction <add>, %41, %cst_17 [1] : vector<16x8xf32> to vector<16xf32>
    %44 = vector.shape_cast %43 : vector<16xf32> to vector<16x1xf32>
    %45 = arith.addf %42, %44 : vector<16x1xf32>
    %46 = vector.broadcast %38 : vector<16x1xf32> to vector<16x8xf32>
    %47 = arith.mulf %46, %23 : vector<16x8xf32>
    %cst_18 = arith.constant dense<0.000000e+00> : vector<16x8xf32>
    %48 = tpu.matmul %41, %25, %cst_18 {dimension_numbers = #tpu.dot_dimension_numbers<[1], [0], [0], [1], [0, 0, 1, 1], [], []>} : vector<16x8xf32>, vector<8x8xf32>, vector<16x8xf32> -> vector<16x8xf32>
    %49 = arith.addf %47, %48 : vector<16x8xf32>
    %50 = vector.extract_strided_slice %19 {offsets = [8, 0], sizes = [8, 8], strides = [1, 1]} : vector<16x8xf32> to vector<8x8xf32>
    %51 = vector.extract_strided_slice %20 {offsets = [8, 0], sizes = [8, 8], strides = [1, 1]} : vector<16x8xf32> to vector<8x8xf32>
    %cst_19 = arith.constant dense<0.000000e+00> : vector<16x8xf32>
    %52 = tpu.matmul %18, %50, %cst_19 {dimension_numbers = #tpu.dot_dimension_numbers<[1], [1], [0], [0], [0, 0, 1, 0], [], []>} : vector<16x8xf32>, vector<8x8xf32>, vector<16x8xf32> -> vector<16x8xf32>
    %53 = tpu.iota {dimensions = array<i32: 1>} : vector<16x8xi32>
    %c8_i32 = arith.constant 8 : i32
    %54 = vector.broadcast %c8_i32 : i32 to vector<16x8xi32>
    %55 = arith.addi %54, %53 : vector<16x8xi32>
    %56 = vector.broadcast %17 : vector<16x1xi32> to vector<16x8xi32>
    %57 = arith.cmpi sge, %56, %55 : vector<16x8xi32>
    %cst_20 = arith.constant -1.000000e+30 : f32
    %58 = vector.broadcast %cst_20 : f32 to vector<16x8xf32>
    %59 = arith.select %57, %52, %58 : vector<16x8xi1>, vector<16x8xf32>
    %cst_21 = arith.constant dense<0xFF800000> : vector<16xf32>
    %60 = vector.multi_reduction <maximumf>, %59, %cst_21 [1] : vector<16x8xf32> to vector<16xf32>
    %61 = vector.shape_cast %60 : vector<16xf32> to vector<16x1xf32>
    %62 = arith.maximumf %36, %61 : vector<16x1xf32>
    %63 = arith.subf %36, %62 : vector<16x1xf32>
    %64 = math.exp %63 : vector<16x1xf32>
    %65 = vector.broadcast %62 : vector<16x1xf32> to vector<16x8xf32>
    %66 = arith.subf %59, %65 : vector<16x8xf32>
    %67 = math.exp %66 : vector<16x8xf32>
    %68 = arith.mulf %64, %45 : vector<16x1xf32>
    %cst_22 = arith.constant dense<0.000000e+00> : vector<16xf32>
    %69 = vector.multi_reduction <add>, %67, %cst_22 [1] : vector<16x8xf32> to vector<16xf32>
    %70 = vector.shape_cast %69 : vector<16xf32> to vector<16x1xf32>
    %71 = arith.addf %68, %70 : vector<16x1xf32>
    %72 = vector.broadcast %64 : vector<16x1xf32> to vector<16x8xf32>
    %73 = arith.mulf %72, %49 : vector<16x8xf32>
    %cst_23 = arith.constant dense<0.000000e+00> : vector<16x8xf32>
    %74 = tpu.matmul %67, %51, %cst_23 {dimension_numbers = #tpu.dot_dimension_numbers<[1], [0], [0], [1], [0, 0, 1, 1], [], []>} : vector<16x8xf32>, vector<8x8xf32>, vector<16x8xf32> -> vector<16x8xf32>
    %75 = arith.addf %73, %74 : vector<16x8xf32>
    %76 = tpu.reciprocal %71 : vector<16x1xf32> -> vector<16x1xf32>
    %77 = vector.broadcast %76 : vector<16x1xf32> to vector<16x8xf32>
    %78 = arith.mulf %75, %77 : vector<16x8xf32>
    %79 = vector.extract_strided_slice %14 {offsets = [0, 8], sizes = [16, 8], strides = [1, 1]} : vector<16x16xf32> to vector<16x8xf32>
    %80 = vector.extract_strided_slice %15 {offsets = [0, 8], sizes = [16, 8], strides = [1, 1]} : vector<16x16xf32> to vector<16x8xf32>
    %81 = vector.extract_strided_slice %16 {offsets = [0, 8], sizes = [16, 8], strides = [1, 1]} : vector<16x16xf32> to vector<16x8xf32>
    %cst_24 = arith.constant -1.000000e+30 : f32
    %82 = vector.broadcast %cst_24 : f32 to vector<16x1xf32>
    %cst_25 = arith.constant 0.000000e+00 : f32
    %83 = vector.broadcast %cst_25 : f32 to vector<16x1xf32>
    %cst_26 = arith.constant 0.000000e+00 : f32
    %84 = vector.broadcast %cst_26 : f32 to vector<16x8xf32>
    %85 = vector.extract_strided_slice %80 {offsets = [0, 0], sizes = [8, 8], strides = [1, 1]} : vector<16x8xf32> to vector<8x8xf32>
    %86 = vector.extract_strided_slice %81 {offsets = [0, 0], sizes = [8, 8], strides = [1, 1]} : vector<16x8xf32> to vector<8x8xf32>
    %cst_27 = arith.constant dense<0.000000e+00> : vector<16x8xf32>
    %87 = tpu.matmul %79, %85, %cst_27 {dimension_numbers = #tpu.dot_dimension_numbers<[1], [1], [0], [0], [0, 0, 1, 0], [], []>} : vector<16x8xf32>, vector<8x8xf32>, vector<16x8xf32> -> vector<16x8xf32>
    %88 = tpu.iota {dimensions = array<i32: 1>} : vector<16x8xi32>
    %c0_i32_28 = arith.constant 0 : i32
    %89 = vector.broadcast %c0_i32_28 : i32 to vector<16x8xi32>
    %90 = arith.addi %89, %88 : vector<16x8xi32>
    %91 = vector.broadcast %17 : vector<16x1xi32> to vector<16x8xi32>
    %92 = arith.cmpi sge, %91, %90 : vector<16x8xi32>
    %cst_29 = arith.constant -1.000000e+30 : f32
    %93 = vector.broadcast %cst_29 : f32 to vector<16x8xf32>
    %94 = arith.select %92, %87, %93 : vector<16x8xi1>, vector<16x8xf32>
    %cst_30 = arith.constant dense<0xFF800000> : vector<16xf32>
    %95 = vector.multi_reduction <maximumf>, %94, %cst_30 [1] : vector<16x8xf32> to vector<16xf32>
    %96 = vector.shape_cast %95 : vector<16xf32> to vector<16x1xf32>
    %97 = arith.maximumf %82, %96 : vector<16x1xf32>
    %98 = arith.subf %82, %97 : vector<16x1xf32>
    %99 = math.exp %98 : vector<16x1xf32>
    %100 = vector.broadcast %97 : vector<16x1xf32> to vector<16x8xf32>
    %101 = arith.subf %94, %100 : vector<16x8xf32>
    %102 = math.exp %101 : vector<16x8xf32>
    %103 = arith.mulf %99, %83 : vector<16x1xf32>
    %cst_31 = arith.constant dense<0.000000e+00> : vector<16xf32>
    %104 = vector.multi_reduction <add>, %102, %cst_31 [1] : vector<16x8xf32> to vector<16xf32>
    %105 = vector.shape_cast %104 : vector<16xf32> to vector<16x1xf32>
    %106 = arith.addf %103, %105 : vector<16x1xf32>
    %107 = vector.broadcast %99 : vector<16x1xf32> to vector<16x8xf32>
    %108 = arith.mulf %107, %84 : vector<16x8xf32>
    %cst_32 = arith.constant dense<0.000000e+00> : vector<16x8xf32>
    %109 = tpu.matmul %102, %86, %cst_32 {dimension_numbers = #tpu.dot_dimension_numbers<[1], [0], [0], [1], [0, 0, 1, 1], [], []>} : vector<16x8xf32>, vector<8x8xf32>, vector<16x8xf32> -> vector<16x8xf32>
    %110 = arith.addf %108, %109 : vector<16x8xf32>
    %111 = vector.extract_strided_slice %80 {offsets = [8, 0], sizes = [8, 8], strides = [1, 1]} : vector<16x8xf32> to vector<8x8xf32>
    %112 = vector.extract_strided_slice %81 {offsets = [8, 0], sizes = [8, 8], strides = [1, 1]} : vector<16x8xf32> to vector<8x8xf32>
    %cst_33 = arith.constant dense<0.000000e+00> : vector<16x8xf32>
    %113 = tpu.matmul %79, %111, %cst_33 {dimension_numbers = #tpu.dot_dimension_numbers<[1], [1], [0], [0], [0, 0, 1, 0], [], []>} : vector<16x8xf32>, vector<8x8xf32>, vector<16x8xf32> -> vector<16x8xf32>
    %114 = tpu.iota {dimensions = array<i32: 1>} : vector<16x8xi32>
    %c8_i32_34 = arith.constant 8 : i32
    %115 = vector.broadcast %c8_i32_34 : i32 to vector<16x8xi32>
    %116 = arith.addi %115, %114 : vector<16x8xi32>
    %117 = vector.broadcast %17 : vector<16x1xi32> to vector<16x8xi32>
    %118 = arith.cmpi sge, %117, %116 : vector<16x8xi32>
    %cst_35 = arith.constant -1.000000e+30 : f32
    %119 = vector.broadcast %cst_35 : f32 to vector<16x8xf32>
    %120 = arith.select %118, %113, %119 : vector<16x8xi1>, vector<16x8xf32>
    %cst_36 = arith.constant dense<0xFF800000> : vector<16xf32>
    %121 = vector.multi_reduction <maximumf>, %120, %cst_36 [1] : vector<16x8xf32> to vector<16xf32>
    %122 = vector.shape_cast %121 : vector<16xf32> to vector<16x1xf32>
    %123 = arith.maximumf %97, %122 : vector<16x1xf32>
    %124 = arith.subf %97, %123 : vector<16x1xf32>
    %125 = math.exp %124 : vector<16x1xf32>
    %126 = vector.broadcast %123 : vector<16x1xf32> to vector<16x8xf32>
    %127 = arith.subf %120, %126 : vector<16x8xf32>
    %128 = math.exp %127 : vector<16x8xf32>
    %129 = arith.mulf %125, %106 : vector<16x1xf32>
    %cst_37 = arith.constant dense<0.000000e+00> : vector<16xf32>
    %130 = vector.multi_reduction <add>, %128, %cst_37 [1] : vector<16x8xf32> to vector<16xf32>
    %131 = vector.shape_cast %130 : vector<16xf32> to vector<16x1xf32>
    %132 = arith.addf %129, %131 : vector<16x1xf32>
    %133 = vector.broadcast %125 : vector<16x1xf32> to vector<16x8xf32>
    %134 = arith.mulf %133, %110 : vector<16x8xf32>
    %cst_38 = arith.constant dense<0.000000e+00> : vector<16x8xf32>
    %135 = tpu.matmul %128, %112, %cst_38 {dimension_numbers = #tpu.dot_dimension_numbers<[1], [0], [0], [1], [0, 0, 1, 1], [], []>} : vector<16x8xf32>, vector<8x8xf32>, vector<16x8xf32> -> vector<16x8xf32>
    %136 = arith.addf %134, %135 : vector<16x8xf32>
    %137 = tpu.reciprocal %132 : vector<16x1xf32> -> vector<16x1xf32>
    %138 = vector.broadcast %137 : vector<16x1xf32> to vector<16x8xf32>
    %139 = arith.mulf %136, %138 : vector<16x8xf32>
    %140 = tpu.concatenate %78, %139 in 1 : vector<16x8xf32>, vector<16x8xf32> -> vector<16x16xf32>
    %c0_39 = arith.constant 0 : index
    %c0_40 = arith.constant 0 : index
    %141 = vector.load %arg10[%c0_39, %c0_40] : memref<16x32xf32, #tpu.memory_space<vmem>>, vector<16x32xf32>
    %c0_41 = arith.constant 0 : index
    %c0_42 = arith.constant 0 : index
    %c0_43 = arith.constant 0 : index
    %142 = vector.load %arg5[%c0_41, %c0_42, %c0_43] : memref<1x16x32xf32, #tpu.memory_space<vmem>>, vector<1x16x32xf32>
    %143 = vector.shape_cast %142 : vector<1x16x32xf32> to vector<16x32xf32>
    %cst_44 = arith.constant dense<0.000000e+00> : vector<16x32xf32>
    %144 = tpu.matmul %140, %143, %cst_44 {dimension_numbers = #tpu.dot_dimension_numbers<[1], [0], [0], [1], [0, 0, 1, 1], [], []>} : vector<16x16xf32>, vector<16x32xf32>, vector<16x32xf32> -> vector<16x32xf32>
    %145 = arith.addf %141, %144 : vector<16x32xf32>
    %c0_45 = arith.constant 0 : index
    %c0_46 = arith.constant 0 : index
    %146 = vector.load %arg10[%c0_45, %c0_46] : memref<16x32xf32, #tpu.memory_space<vmem>>, vector<16x32xf32>
    tpu.vector_store %arg10[%c0_45, %c0_46], %145 {strides = array<i32>} : memref<16x32xf32, #tpu.memory_space<vmem>>, vector<16x32xf32>,
    %c1_i32 = arith.constant 1 : i32
    %147 = arith.cmpi eq, %arg1, %c1_i32 : i32
    %148 = arith.extui %147 : i1 to i32
    %c0_i32_47 = arith.constant 0 : i32
    %149 = arith.cmpi ne, %148, %c0_i32_47 : i32
    scf.if %149 {
      %c0_48 = arith.constant 0 : index
      %c0_49 = arith.constant 0 : index
      %150 = vector.load %arg10[%c0_48, %c0_49] : memref<16x32xf32, #tpu.memory_space<vmem>>, vector<16x32xf32>
      %c0_50 = arith.constant 0 : index
      %c0_51 = arith.constant 0 : index
      %151 = vector.load %arg6[%c0_50, %c0_51] : memref<1x32xf32, #tpu.memory_space<vmem>>, vector<1x32xf32>
      %152 = vector.broadcast %151 : vector<1x32xf32> to vector<16x32xf32>
      %153 = arith.addf %150, %152 : vector<16x32xf32>
      %c0_52 = arith.constant 0 : index
      %c0_53 = arith.constant 0 : index
      %c0_54 = arith.constant 0 : index
      %154 = vector.load %arg2[%c0_52, %c0_53, %c0_54] : memref<1x16x32xf32, #tpu.memory_space<vmem>>, vector<1x16x32xf32>
      %155 = vector.shape_cast %154 : vector<1x16x32xf32> to vector<16x32xf32>
      %156 = arith.addf %153, %155 : vector<16x32xf32>
      %cst_55 = arith.constant dense<0.000000e+00> : vector<16xf32>
      %157 = vector.multi_reduction <add>, %156, %cst_55 [1] : vector<16x32xf32> to vector<16xf32>
      %158 = vector.shape_cast %157 : vector<16xf32> to vector<16x1xf32>
      %cst_56 = arith.constant 3.200000e+01 : f32
      %159 = vector.broadcast %cst_56 : f32 to vector<16x1xf32>
      %160 = arith.divf %158, %159 : vector<16x1xf32>
      %161 = vector.broadcast %160 : vector<16x1xf32> to vector<16x32xf32>
      %162 = arith.subf %156, %161 : vector<16x32xf32>
      %163 = arith.mulf %162, %162 : vector<16x32xf32>
      %cst_57 = arith.constant dense<0.000000e+00> : vector<16xf32>
      %164 = vector.multi_reduction <add>, %163, %cst_57 [1] : vector<16x32xf32> to vector<16xf32>
      %165 = vector.shape_cast %164 : vector<16xf32> to vector<16x1xf32>
      %cst_58 = arith.constant 3.200000e+01 : f32
      %166 = vector.broadcast %cst_58 : f32 to vector<16x1xf32>
      %167 = arith.divf %165, %166 : vector<16x1xf32>
      %cst_59 = arith.constant 9.99999974E-6 : f32
      %168 = vector.broadcast %cst_59 : f32 to vector<16x1xf32>
      %169 = arith.addf %167, %168 : vector<16x1xf32>
      %170 = math.rsqrt %169 : vector<16x1xf32>
      %171 = vector.broadcast %170 : vector<16x1xf32> to vector<16x32xf32>
      %172 = arith.mulf %162, %171 : vector<16x32xf32>
      %c0_60 = arith.constant 0 : index
      %c0_61 = arith.constant 0 : index
      %173 = vector.load %arg7[%c0_60, %c0_61] : memref<1x32xf32, #tpu.memory_space<vmem>>, vector<1x32xf32>
      %174 = vector.broadcast %173 : vector<1x32xf32> to vector<16x32xf32>
      %175 = arith.mulf %172, %174 : vector<16x32xf32>
      %c0_62 = arith.constant 0 : index
      %c0_63 = arith.constant 0 : index
      %176 = vector.load %arg8[%c0_62, %c0_63] : memref<1x32xf32, #tpu.memory_space<vmem>>, vector<1x32xf32>
      %177 = vector.broadcast %176 : vector<1x32xf32> to vector<16x32xf32>
      %178 = arith.addf %175, %177 : vector<16x32xf32>
      %c0_64 = arith.constant 0 : index
      %c0_65 = arith.constant 0 : index
      %c0_66 = arith.constant 0 : index
      %179 = vector.load %arg9[%c0_64, %c0_65, %c0_66] : memref<1x16x32xf32, #tpu.memory_space<vmem>>, vector<1x16x32xf32>
      %180 = vector.shape_cast %179 : vector<1x16x32xf32> to vector<16x32xf32>
      %181 = vector.shape_cast %178 : vector<16x32xf32> to vector<1x16x32xf32>
      tpu.vector_store %arg9[%c0_64, %c0_65, %c0_66], %181 {strides = array<i32>} : memref<1x16x32xf32, #tpu.memory_space<vmem>>, vector<1x16x32xf32>,
    } else {
    }
    return
  }
  func.func @transform_0(%arg0: i32, %arg1: i32) -> (i32, i32, i32) {
    %c0_i32 = arith.constant 0 : i32
    %c0_i32_0 = arith.constant 0 : i32
    %c0_i32_1 = arith.constant 0 : i32
    return %arg0, %c0_i32, %c0_i32_0 : i32, i32, i32
  }
  func.func @transform_1(%arg0: i32, %arg1: i32) -> (i32, i32, i32) {
    %c0_i32 = arith.constant 0 : i32
    %c0_i32_0 = arith.constant 0 : i32
    %c0_i32_1 = arith.constant 0 : i32
    return %arg1, %c0_i32, %c0_i32_0 : i32, i32, i32
  }
  func.func @transform_2(%arg0: i32, %arg1: i32) -> (i32, i32, i32) {
    %c0_i32 = arith.constant 0 : i32
    %c0_i32_0 = arith.constant 0 : i32
    %c0_i32_1 = arith.constant 0 : i32
    return %arg1, %c0_i32, %c0_i32_0 : i32, i32, i32
  }
  func.func @transform_3(%arg0: i32, %arg1: i32) -> (i32, i32, i32) {
    %c0_i32 = arith.constant 0 : i32
    %c0_i32_0 = arith.constant 0 : i32
    %c0_i32_1 = arith.constant 0 : i32
    return %arg1, %c0_i32, %c0_i32_0 : i32, i32, i32
  }
  func.func @transform_4(%arg0: i32, %arg1: i32) -> (i32, i32) {
    %c0_i32 = arith.constant 0 : i32
    %c0_i32_0 = arith.constant 0 : i32
    %c0_i32_1 = arith.constant 0 : i32
    return %c0_i32, %c0_i32_0 : i32, i32
  }
  func.func @transform_5(%arg0: i32, %arg1: i32) -> (i32, i32) {
    %c0_i32 = arith.constant 0 : i32
    %c0_i32_0 = arith.constant 0 : i32
    %c0_i32_1 = arith.constant 0 : i32
    return %c0_i32, %c0_i32_0 : i32, i32
  }
  func.func @transform_6(%arg0: i32, %arg1: i32) -> (i32, i32) {
    %c0_i32 = arith.constant 0 : i32
    %c0_i32_0 = arith.constant 0 : i32
    %c0_i32_1 = arith.constant 0 : i32
    return %c0_i32, %c0_i32_0 : i32, i32
  }
  func.func @transform_7(%arg0: i32, %arg1: i32) -> (i32, i32, i32) {
    %c0_i32 = arith.constant 0 : i32
    %c0_i32_0 = arith.constant 0 : i32
    %c0_i32_1 = arith.constant 0 : i32
    return %arg0, %c0_i32, %c0_i32_0 : i32, i32, i32
  }
}

</mosaic_0001>

<bundles_post_ra>
// kernel: tpu_custom_call.1
= control target key start
LH: loop header
LB: loop body
LE: loop exit
PB: predicated region body
PF: predicated region fallthrough
CT: control target
= control target key end

     0   :  { %s2755_s0 = inlined_call_operand.hbm [shape: f32[2,16,32], index: 0, kind: input, shape index: {}]   ;;  %s2756_s1 = inlined_call_operand.hbm [shape: f32[2,32,48], index: 1, kind: input, shape index: {}]   ;;  %s2757_s2 = inlined_call_operand.vmem [shape: f32[2,1,48], index: 2, kind: input, shape index: {}]   ;;  %s2758_s3 = inlined_call_operand.hbm [shape: f32[2,16,32], index: 3, kind: input, shape index: {}]   ;;  %s2759_s4 = inlined_call_operand.vmem [shape: f32[1,32], index: 4, kind: input, shape index: {}]   ;;  %s2760_s5 = inlined_call_operand.vmem [shape: f32[1,32], index: 5, kind: input, shape index: {}]   ;;  %s2761_s6 = inlined_call_operand.vmem [shape: f32[1,32], index: 6, kind: input, shape index: {}]   ;;  %s2762_s7 = inlined_call_operand.hbm [shape: f32[2,16,32], index: 7, kind: output, shape index: {}]  }
   0x1   :  { %2782 = sst [smem:[#allocation23_spill]] %s2756_s1 }
   0x2   :  { %2783 = sst [smem:[#allocation24_spill]] %s2759_s4 }
   0x3   :  { %2784 = sst [smem:[#allocation25_spill]] %s2760_s5 }
   0x4   :  { %2785 = sst [smem:[#allocation26_spill]] %s2761_s6 }
   0x5   :  { %2786 = sst [smem:[#allocation27_spill]] %s2762_s7 }
   0x6   :  { %12 = vsyncpa [#allocation4], 0 }
   0x7   :  { %14 = vsyncpa [#allocation4 + $0x1], 0 }
   0x8   :  { %15 = vsyncpa [#allocation7], 0 }
   0x9   :  { %17 = vsyncpa [#allocation7 + $0x1], 0 }
   0xa   :  { %18 = vsyncpa [#allocation5], 0 }
   0xb   :  { %20 = vsyncpa [#allocation5 + $0x1], 0  ;;  %s2248_s24 = smov 0   ;;  %s2250_s25 = smov 0  }
   0xc   :  { %s2252_s26 = smov 0   ;;  %s2254_s27 = smov 0  }
   0xd   :  { %s2256_s28 = smov 0   ;;  %s2258_s29 = smov 0  }
   0xe   :  { %s2260_s30 = smov 0   ;;  %s2262_s8 = smov 0  }
   0xf   :  { %s2264_s9 = smov 0   ;;  %s2266_s10 = smov 0  }
  0x10   :  { %s2268_s11 = smov 0  }
  0x11 LB: > { %2787 = sst [smem:[#allocation13_spill]] %s2159_s26  ;;  %s2302_s12 = sadd.s32 4294967295, %s2191_s11   ;;  %s2191_s11 = sphi %s2268_s11, %s26_s11   ;;  %s2187_s10 = sphi %s2266_s10, %s2833_s10   ;;  %s2183_s9 = sphi %s2264_s9, %s2832_s9   ;;  %s2179_s8 = sphi %s2262_s8, %s2831_s8   ;;  %s2175_s30 = sphi %s2260_s30, %s2830_s30   ;;  %s2171_s29 = sphi %s2258_s29, %s2829_s29   ;;  %s2167_s28 = sphi %s2256_s28, %s2837_s28   ;;  %s2163_s27 = sphi %s2254_s27, %s2836_s27   ;;  %s2159_s26 = sphi %s2252_s26, %s2827_s26   ;;  %s2155_s25 = sphi %s2250_s25, %s2835_s25   ;;  %s2151_s24 = sphi %s2248_s24, %s2834_s24  }
  0x12   : > { %2788 = sst [smem:[#allocation14_spill]] %s2163_s27  ;;  %s35_s13 = sadd.s32 1, %s2183_s9 }
  0x13   : > { %2789 = sst [smem:[#allocation15_spill]] %s2171_s29  ;;  %p2305_p0 = scmp.ge.s32.totalorder %s35_s13, 2 }
  0x14   : > { %2790 = sst [smem:[#allocation16_spill]] %s2179_s8  ;;  %p2768_p1 = scmp.eq.s32.totalorder %s2191_s11, 0 }
  0x15   : > { %2791 = sst [smem:[#allocation17_spill]] %s2183_s9  ;;  %p2767_p2 = scmp.eq.s32.totalorder %s2302_s12, 0 }
  0x16   : > { %2792 = sst [smem:[#allocation18_spill]] %s2187_s10  ;;  %s71_s15 = sadd.s32 1, %s2159_s26 }
  0x17   : > { %s2839_s13 = smov (%p2305_p0, %s35_s13), 0  ;;  %p78_p3 = scmp.ne.s32.totalorder %s2159_s26, %s2155_s25 }
  0x18   : > { %2794 = sst [smem:[#allocation19_spill]] %s2839_s13  ;;  %p84_p4 = scmp.ne.s32.totalorder %s2155_s25, %s2151_s24 }
  0x19   : > { %s68_s16 = ssub.s32 %s2183_s9, %s2839_s13  ;;  %p80_p6 = por %p78_p3, %p2768_p1 }
  0x1a   : > { %p69_p5 = scmp.eq.s32.totalorder %s68_s16, 0  ;;  %p2325_p7 = por %p84_p4, %p2767_p2 }
  0x1b   : > { %p2766_p8 = scmp.lt.s32.totalorder %s2191_s11, 4  ;;  %s279_s19 = sand.u32 1, %s2191_s11  }
  0x1c   : > { %s2795_s17 = scalar_select %p2325_p7, 1, 0 }
  0x1d   : > { %s2331_s18 = scalar_select %p69_p5, %s2159_s26, %s71_s15  }
  0x1e   : > { %s281_s20 = sand.u32 1, %s2159_s26   ;;  %s1701_s22 = sshll.u32 %s2183_s9, 9 }
  0x1f   : > { %2796 = sst [smem:[#allocation20_spill]] %s2331_s18  ;;  %s1654_s21 = sshll.u32 %s281_s20, 5 }
  0x20   : > { %s2797_s1 = sld [smem:[#allocation23_spill]]  ;;  %s283_s16 = scalar_lea.vmem [#allocation6], %s1654_s21 }
  0x21   : > { %s290_s13 = sshll.u32 %s283_s16, 4  ;;  %p2345_p9 = pnand %p2766_p8, %p80_p6  ;;  %s2341_s13 = int_to_ptr.vmem [resolvable:$true] %s290_s13 }
  0x22   : > { %s2349_s18 = sshll.u32 %s281_s20, 4  ;;  %s2352_s7 = scalar_lea.sflag [#allocation7], %s279_s19 }
  0x23   : > { %p2779_p12 = pneg %p2345_p9 }
  0x26   : > { %s2339_s24 = scalar_lea.hbm %s2797_s1, %s1701_s22  ;;  %s1980_s16 = scalar_lea.hbm %s2797_s1, 1024 }
  0x27   : > { %s1975_s22 = scalar_lea.hbm %s2339_s24, 512  ;;  %p1981_p4 = scmp.lt.u32.totalorder %s2339_s24, %s2797_s1 }
  0x28   : > { %p1976_p11 = scmp.ne.s32.totalorder %s2339_s24, %s1975_s22  ;;  %p1982_p5 = scmp.lt.u32.totalorder %s1980_s16, %s1975_s22 }
  0x29   : > { %p1984_p8 = scmp.lt.u32.totalorder %s1975_s22, %s2339_s24 }
  0x2a   : > { %p1978_p13 = pnand %p2779_p12, %p1976_p11  ;;  %p1983_p6 = por %p1982_p5, %p1981_p4 }
  0x2c   : > { %p1979_p3 = pneg %p1978_p13  ;;  %p1985_p2 = por %p1984_p8, %p1983_p6 }
  0x2e   : > { %p1986_p1 = pnand %p1985_p2, %p1979_p3 }
  0x30   : > { %1989 = shalt.err (!%p1986_p1)
}
  0x31   : > { %s1990_s19 = scalar_lea.vmem %s2341_s13, 512  ;;  %s2193_s20 = smov [#allocation6]  }
  0x32   : > { %p1991_p11 = scmp.ne.s32.totalorder %s2341_s13, %s1990_s19  ;;  %s1995_s21 = sshll.u32 %s2193_s20, 4  ;;  %s1996_s21 = int_to_ptr.vmem [resolvable:$false] %s1995_s21 }
  0x33   : > { %s1997_s26 = scalar_lea.vmem %s1996_s21, 1024  ;;  %p1998_p7 = scmp.lt.s32.totalorder %s2341_s13, %s1996_s21 }
  0x34   : > { %p1993_p13 = pnand %p1991_p11, %p2779_p12  ;;  %p1999_p4 = scmp.lt.s32.totalorder %s1997_s26, %s1990_s19 }
  0x36   : > { %p1994_p10 = pneg %p1993_p13  ;;  %p2000_p5 = por %p1999_p4, %p1998_p7 }
  0x38   : > { %p2001_p8 = pnand %p2000_p5, %p1994_p10 }
  0x3a   : > { %2004 = shalt.err (!%p2001_p8)
}
  0x3b   : > { %s2770_s8 = smov 128   ;;  %s2772_s22 = smov 8  }
  0x3c   : > { %1822 = dma.hbm_to_vmem [thread:$0]  (!%p2345_p9), %s2339_s24, 512, %s2341_s13, %s2352_s7, %s2770_s8, %s2770_s8, %s2772_s22  }
  0x3d   : > { %s310_s23 = scalar_lea.vmem [#allocation8], %s2349_s18  ;;  %p325_p1 = scmp.lt.s32.totalorder %s2191_s11, 5 }
  0x3e   : > { %s317_s16 = sshll.u32 %s310_s23, 4  ;;  %p2799_p2 = scmp.ge.s32.totalorder %s2191_s11, 1  ;;  %s2447_s16 = int_to_ptr.vmem [resolvable:$true] %s317_s16 }
  0x3f   : > { %s1648_s20 = sadd.s32 4294967294, %s2191_s11   ;;  %s38_s21 = sadd.s32 1, %s2187_s10 }
  0x40   : > { %p2387_p7 = pnand %p2799_p2, %p325_p1  ;;  %s45_s26 = sadd.s32 1, %s2171_s29 }
  0x41   : > { %s2841_s21 = smov (!%p2305_p0, %s38_s21), %s2187_s10  ;;  %p52_p10 = scmp.ne.s32.totalorder %s2171_s29, %s2167_s28 }
  0x42   : > { %s2800_s19 = scalar_select %p2387_p7, 1, 0 }
  0x43   : > { %p58_p3 = scmp.ne.s32.totalorder %s2167_s28, %s2163_s27  ;;  %p40_p6 = scmp.ge.s32.totalorder %s2841_s21, 2 }
  0x44   : > { %p223_p11 = scmp.eq.s32.totalorder %s2302_s12, 3  ;;  %p2801_p13 = scmp.eq.s32.totalorder %s2191_s11, 0 }
  0x45   : > { %p2803_p5 = scmp.eq.s32.totalorder %s2302_s12, 0  ;;  %s2843_s21 = smov (%p40_p6, %s2841_s21), 0 }
  0x46   : > { %p2404_p4 = por %p2801_p13, %p52_p10  ;;  %2805 = sst [smem:[#allocation21_spill]] %s2843_s21 }
  0x47   : > { %p2410_p8 = por %p2803_p5, %p58_p3  ;;  %p2416_p0 = por %p223_p11, %p52_p10 }
  0x48   : > { %p229_p1 = scmp.eq.s32.totalorder %s1648_s20, 3  ;;  %s42_s24 = ssub.s32 %s2187_s10, %s2843_s21 }
  0x49   : > { %s2804_s18 = scalar_select %p2410_p8, 1, 0 }
  0x4a   : > { %s2806_s14 = scalar_select %p2416_p0, 1, 0 }
  0x4b   : > { %s258_s23 = sand.u32 1, %s2171_s29   ;;  %p43_p2 = scmp.eq.s32.totalorder %s42_s24, 0 }
  0x4c   : > { %p2423_p13 = por %p229_p1, %p58_p3  ;;  %s1651_s22 = sshll.u32 %s258_s23, 4 }
  0x4d   : > { %s2428_s1 = scalar_select %p43_p2, %s2171_s29, %s45_s26  }
  0x4e   : > { %s2807_s8 = scalar_select %p2423_p13, 1, 0 }
  0x4f   : > { %2808 = sst [smem:[#allocation22_spill]] %s2428_s1  ;;  %s1700_s27 = sshll.u32 %s2187_s10, 8 }
  0x50   : > { %s2434_s4 = scalar_lea.hbm %s2755_s0, %s1700_s27  ;;  %s262_s20 = scalar_lea.vmem [#allocation3], %s1651_s22 }
  0x51   : > { %s269_s21 = sshll.u32 %s262_s20, 4  ;;  %p2809_p10 = scmp.lt.s32.totalorder %s2191_s11, 4  ;;  %s2436_s21 = int_to_ptr.vmem [resolvable:$true] %s269_s21 }
  0x52   : > { %s1702_s26 = sshll.u32 %s2183_s9, 8  ;;  %s2454_s22 = scalar_lea.sflag [#allocation4], %s258_s23 }
  0x53   : > { %p2442_p3 = pnand %p2809_p10, %p2404_p4  ;;  %s2452_s27 = scalar_lea.hbm %s2758_s3, %s1702_s26 }
  0x54   : > { %s2005_s20 = scalar_lea.hbm %s2434_s4, 256  ;;  %s2010_s9 = scalar_lea.hbm %s2755_s0, 512 }
  0x55   : > { %p2006_p6 = scmp.ne.s32.totalorder %s2434_s4, %s2005_s20  ;;  %p2007_p11 = pneg %p2442_p3 }
  0x56   : > { %p2011_p1 = scmp.lt.u32.totalorder %s2434_s4, %s2755_s0  ;;  %p2012_p2 = scmp.lt.u32.totalorder %s2010_s9, %s2005_s20 }
  0x57   : > { %p2008_p4 = pnand %p2007_p11, %p2006_p6  ;;  %p2014_p12 = scmp.lt.u32.totalorder %s2005_s20, %s2434_s4 }
  0x58   : > { %p2013_p10 = por %p2012_p2, %p2011_p1 }
  0x59   : > { %p2009_p5 = pneg %p2008_p4 }
  0x5a   : > { %p2015_p13 = por %p2014_p12, %p2013_p10 }
  0x5c   : > { %p2016_p0 = pnand %p2015_p13, %p2009_p5 }
  0x5e   : > { %2019 = shalt.err (!%p2016_p0)
}
  0x5f   : > { %s2020_s23 = scalar_lea.vmem %s2436_s21, 256  ;;  %s2196_s10 = smov [#allocation3]  }
  0x60   : > { %p2021_p6 = scmp.ne.s32.totalorder %s2436_s21, %s2020_s23  ;;  %s2025_s26 = sshll.u32 %s2196_s10, 4  ;;  %s2026_s26 = int_to_ptr.vmem [resolvable:$false] %s2025_s26 }
  0x61   : > { %s2027_s1 = scalar_lea.vmem %s2026_s26, 512  ;;  %p2028_p7 = scmp.lt.s32.totalorder %s2436_s21, %s2026_s26 }
  0x62   : > { %p2023_p4 = pnand %p2021_p6, %p2007_p11  ;;  %p2029_p1 = scmp.lt.s32.totalorder %s2027_s1, %s2020_s23 }
  0x64   : > { %p2024_p8 = pneg %p2023_p4  ;;  %p2030_p2 = por %p2029_p1, %p2028_p7 }
  0x66   : > { %p2031_p12 = pnand %p2030_p2, %p2024_p8 }
  0x68   : > { %2034 = shalt.err (!%p2031_p12)
}
  0x69   : > { %s2811_s29 = smov 8   ;;  %s2812_s9 = smov 128  }
  0x6a   : > { %1819 = dma.hbm_to_vmem [thread:$0]  (!%p2442_p3), %s2434_s4, 256, %s2436_s21, %s2454_s22, %s2812_s9, %s2812_s9, %s2811_s29  }
  0x6b   : > { %s2035_s5 = scalar_lea.hbm %s2452_s27, 256  ;;  %p2813_p7 = pneg %p2345_p9 }
  0x6c   : > { %p2036_p0 = scmp.ne.s32.totalorder %s2452_s27, %s2035_s5  ;;  %s2040_s20 = scalar_lea.hbm %s2758_s3, 512 }
  0x6d   : > { %p2041_p11 = scmp.lt.u32.totalorder %s2452_s27, %s2758_s3  ;;  %p2042_p5 = scmp.lt.u32.totalorder %s2040_s20, %s2035_s5 }
  0x6e   : > { %p2038_p8 = pnand %p2036_p0, %p2813_p7  ;;  %p2044_p6 = scmp.lt.u32.totalorder %s2035_s5, %s2452_s27 }
  0x6f   : > { %p2043_p10 = por %p2042_p5, %p2041_p11 }
  0x70   : > { %p2039_p13 = pneg %p2038_p8 }
  0x71   : > { %p2045_p4 = por %p2044_p6, %p2043_p10 }
  0x73   : > { %p2046_p1 = pnand %p2045_p4, %p2039_p13 }
  0x75   : > { %2049 = shalt.err (!%p2046_p1)
}
  0x76   : > { %s2050_s4 = scalar_lea.vmem %s2447_s16, 256  ;;  %p2814_p2 = pmov %p2813_p7 }
  0x77   : > { %p2051_p3 = scmp.ne.s32.totalorder %s2447_s16, %s2050_s4  ;;  %s2197_s21 = smov [#allocation8]  }
  0x78   : > { %s2055_s22 = sshll.u32 %s2197_s21, 4  ;;  %s2056_s22 = int_to_ptr.vmem [resolvable:$false] %s2055_s22 }
  0x79   : > { %p2053_p12 = pnand %p2051_p3, %p2814_p2  ;;  %s2057_s10 = scalar_lea.vmem %s2056_s22, 512 }
  0x7a   : > { %p2058_p7 = scmp.lt.s32.totalorder %s2447_s16, %s2056_s22  ;;  %p2059_p8 = scmp.lt.s32.totalorder %s2057_s10, %s2050_s4 }
  0x7b   : > { %p2054_p0 = pneg %p2053_p12 }
  0x7c   : > { %p2060_p11 = por %p2059_p8, %p2058_p7 }
  0x7e   : > { %p2061_p5 = pnand %p2060_p11, %p2054_p0 }
  0x80   : > { %2064 = shalt.err (!%p2061_p5)
}
  0x81   : > { %1825 = dma.hbm_to_vmem [thread:$0]  (!%p2345_p9), %s2452_s27, 256, %s2447_s16, %s2352_s7, %s2812_s9, %s2812_s9, %s2811_s29  }
  0x82   : > { %p2815_p13 = scmp.ne.s32.totalorder %s2800_s19, 0 }
  0x83   : > { %s2515_s26 = sand.u32 (!%p2815_p13), 1, %s2167_s28   ;;  %p2816_p10 = scmp.ne.s32.totalorder (!%p2815_p13), %s2804_s18, 0 }
  0x84   : > { %329 = sbr.rel (%p2815_p13) target bundleno = 1803 (0x70b), region = 48  ;;  %s1661_s1 = sshll.u32 (!%p2815_p13), %s2515_s26, 4 }
  0x85   : > { %s332_s5 = scalar_lea.sflag (!%p2815_p13), [#allocation4], %s2515_s26  ;;  %s2519_s6 = scalar_lea.vmem (!%p2815_p13), [#allocation3], %s1661_s1 }
  0x8b   : > { %2138 = dma.done.wait (%p2816_p10), %s332_s5, 256  }
  0x8c   : > { %2140 = vsyncadd (%p2816_p10), %s332_s5, 4294967040  ;;  %s340_s15 = sand.u32 1, %s2302_s12   ;;  %s342_s7 = sand.u32 1, %s2155_s25  }
  0x8d   : > { %s1662_s16 = sshll.u32 %s342_s7, 5  ;;  %s341_s19 = scalar_lea.sflag [#allocation7], %s340_s15 }
  0x8e   : > { %s344_s27 = scalar_lea.vmem [#allocation6], %s1662_s16  ;;  %p2817_p9 = scmp.ne.s32.totalorder %s2795_s17, 0 }
  0x90   : > { %2142 = dma.done.wait (%p2817_p9), %s341_s19, 768  }
  0x91   : > { %2144 = vsyncadd (%p2817_p9), %s341_s19, 4294966528  ;;  %s2531_s29 = sshll.u32 %s342_s7, 4  ;;  %p397_p6 = scmp.lt.s32.totalorder %s2175_s30, 1 }
  0x92   : > { %s353_s20 = scalar_lea.vmem [#allocation8], %s2531_s29  ;;  %s2539_s13 = scalar_lea.vmem [#allocation9], %s1661_s1 }
  0x93   : > { %s398_s18 = scalar_select %p397_p6, %s2175_s30, 1 }
  0x94   : > { %p1665_p4 = scmp.ne.s32.totalorder %s2175_s30, 0 }
  0x95   : > { %s399_s12 = scalar_lea.vmem %s2757_s2, %s398_s18  ;;  %vm404_vm0 = vcmask (!%p1665_p4), 261120   ;;  %v2198_v0 = vmov (!%p1665_p4), 0.0  }
  0x96   : > { %403 = sbr.rel (%p1665_p4) target bundleno = 157 (0x9d), region = 64  ;;  %405 = vst.msk [vmem:[#allocation2] sm:$0xff] (!%p1665_p4), %vm404_vm0, %v2198_v0  ;;  %406 = vst.msk [vmem:[#allocation2 + $0x8] sm:$0xff] (!%p1665_p4), %vm404_vm0, %v2198_v0 }
  0x9d PF: > { %v409_v1 = vld [vmem:[%s344_s27] sm:$0xff]  ;;  %v410_v2 = vld [vmem:[%s344_s27 + $0x8] sm:$0xff]  ;;  %v411_v3 = vld [vmem:[%s344_s27 + $0x10] sm:$0xff]  ;;  %vm420_vm1 = vcmask 261120   ;;  %vm510_vm2 = vcmask 64512   ;;  %s2199_s17 = smov 104   ;;  %v504_v26 = vlaneseq }
  0x9e   : > { %v1796_v4 = vpack.c.bf16 %v410_v2, %v409_v1  ;;  %v412_v5 = vld [vmem:[%s344_s27 + $0x18] sm:$0xff]  ;;  %v407_v6 = vld [vmem:[%s2519_s6] sm:$0xff]  ;;  %s2200_s23 = smov 112   ;;  %s2201_s4 = smov 120   ;;  %v2202_v16 = vmov -inf   ;;  %vm1345_vm6 = vcmask 130048  }
  0x9f   : > { %v1800_v7 = vpack.c.bf16 %v412_v5, %v411_v3  ;;  %1746 = vmatprep.mubr.msk.f32.mxu0 %vm420_vm1, %v407_v6  ;;  %v408_v8 = vld [vmem:[%s2519_s6 + $0x8] sm:$0xff]  ;;  %v1666_v9 = vld [vmem:[%s399_s12] ss:$0 sm:$0xff]  ;;  %v801_v17 = vsel %vm510_vm2, -1e+30, %v2202_v16  ;;  %s2203_s21 = smov 96  }
  0xa0   : > { %1797 = vmatprep.subr.bf16.mxu0 %v1796_v4  ;;  %v505_v27 = vshrl.u32 %v504_v26, 7  ;;  %v595_v29 = vand.u32 127, %v504_v26  ;;  %s2204_s22 = smov 88   ;;  %s2205_s10 = smov 8  }
  0xa1   : > { %1799 = vmatpush3.bf16.msra.mxu0 %v1796_v4  ;;  %p1691_p1 = scmp.ne.s32.totalorder %s2175_s30, 1 }
  0xa2   : > { %1801 = vmatprep.subr.bf16.mxu0 %v1800_v7  ;;  %v506_v28 = vadd.s32 8, %v505_v27  ;;  %v796_v30 = vadd.s32 8, %v595_v29  ;;  %vm596_vm5 = vcmp.ge.s32.totalorder %v505_v27, %v595_v29  ;;  %s2818_s15 = sld [smem:[#allocation24_spill]] (!%p1691_p1)  ;;  %s2819_s7 = sld [smem:[#allocation25_spill]] (!%p1691_p1) }
  0xa3   : > { %s2820_s27 = sld [smem:[#allocation26_spill]] (!%p1691_p1) }
  0xa4   : > { %vm597_vm3 = vcmp.ge.s32.totalorder %v506_v28, %v595_v29  ;;  %vm798_vm4 = vcmp.ge.s32.totalorder %v506_v28, %v796_v30 }
  0xa5   : > { %1803 = vmatpush3.bf16.msra.mxu0 %v1800_v7 }
  0xa8   : > { %1747 = vmatmul.mubr.msk.f32.vlgmr.msra.gmra.mrb[0].mxu0 %vm420_vm1, %v408_v8 }
 0x17b   : > { %v1748_v10 = vpop.f32.mrb[0].mxu0 }
 0x17c   : > { %v493_v11 = vpop.f32.mrb[1].mxu0  ;;  %v2551_v14 = vadd.f32 %v1748_v10, %v1666_v9 }
 0x17d   : > { %v2546_v12 = vadd.f32 %v1666_v9, %v493_v11 }
 0x17e   : > { %v503_v15 = vmul.f32 0.35355338, %v2551_v14 }
 0x17f   : > { %927 = vrot.lane.b32.xlu1 %v2546_v12, %s2199_s17  ;;  %508 = vrot.lane.b32.xlu0 %v2546_v12, %s2200_s23  ;;  %v502_v13 = vmul.f32 0.35355338, %v2546_v12 }
 0x181   : > { %1751 = vmatprep.mubr.msk.f32.mxu1 %vm510_vm2, %v502_v13  ;;  %1761 = vmatprep.mubr.msk.f32.mxu0 %vm510_vm2, %v502_v13 }
 0x183   : > { %717 = vrot.lane.b32.xlu0 %v2551_v14, %s2200_s23  ;;  %923 = vrot.lane.b32.xlu1 %v502_v13, %s2201_s4 }
 0x187   : > { %925 = vrot.lane.b32.xlu0 %v503_v15, %s2201_s4  ;;  %1128 = vrot.lane.b32.xlu1 %v2551_v14, %s2199_s17 }
 0x1a6   : > { %802 = vmax.xlane.f32.xlu0 %v801_v17 }
 0x1ab   : > { %1210 = vmax.xlane.f32.xlu1 %v801_v17 }
 0x1bc   : > { %630 = vrot.lane.b32.xlu1 %v2546_v12, %s2203_s21 }
 0x1f1   : > { %v928_v18 = vpop.permute.xlu1 %927  ;;  %v509_v19 = vpop.permute.xlu0 %508 }
 0x1f2   : > { %1749 = vmatprep.subr.msk.mxu1 %vm510_vm2, %v509_v19 }
 0x1f3   : > { %1750 = vmatpush3.xpose.msk.msra.mxu1 %vm510_vm2, %v509_v19 }
 0x1f5   : > { %v718_v20 = vpop.permute.xlu0 %717  ;;  %v924_v21 = vpop.permute.xlu1 %923 }
 0x1f6   : > { %1752 = vmatmul.mubr.msk.f32.vlgmr.msra.gmra.mrb[0].mxu1 %vm510_vm2, %v503_v15  ;;  %1759 = vmatprep.subr.msk.mxu0 %vm510_vm2, %v718_v20 }
 0x1f7   : > { %1760 = vmatpush3.xpose.msk.msra.mxu0 %vm510_vm2, %v718_v20 }
 0x1f8   : > { %1769 = vmatprep.subr.msk.mxu0 %vm510_vm2, %v928_v18 }
 0x1f9   : > { %v1129_v22 = vpop.permute.xlu1 %1128  ;;  %v926_v23 = vpop.permute.xlu0 %925 }
 0x1fa   : > { %1762 = vmatmul.mubr.msk.f32.vlgmr.msra.gmra.mrb[2].mxu0 %vm510_vm2, %v503_v15 }
 0x1fb   : > { %1770 = vmatpush3.xpose.msk.msra.mxu0 %vm510_vm2, %v928_v18  ;;  %1771 = vmatprep.mubr.msk.f32.mxu0 %vm510_vm2, %v924_v21 }
 0x1fc   : > { %1779 = vmatprep.subr.msk.mxu0 %vm510_vm2, %v1129_v22 }
 0x1fe   : > { %1772 = vmatmul.mubr.msk.f32.vlgmr.msra.gmra.mrb[4].mxu0 %vm510_vm2, %v926_v23 }
 0x1ff   : > { %1780 = vmatpush3.xpose.msk.msra.mxu0 %vm510_vm2, %v1129_v22  ;;  %1781 = vmatprep.mubr.msk.f32.mxu0 %vm510_vm2, %v924_v21 }
 0x202   : > { %1782 = vmatmul.mubr.msk.f32.vlgmr.msra.gmra.mrb[6].mxu0 %vm510_vm2, %v926_v23 }
 0x233   : > { %v803_v51 = vpop.xlane.xlu0 %802 }
 0x238   : > { %v1211_v24 = vpop.xlane.xlu1 %1210 }
 0x23c   : > { %v631_v25 = vpop.permute.xlu1 %630 }
 0x23d   : > { %1754 = vmatprep.subr.mxu1 %v631_v25 }
 0x23e   : > { %1755 = vmatpush3.msra.mxu1 %v631_v25 }
 0x2c9   : > { %v1753_v31 = vpop.f32.mrb[0].mxu1 }
 0x2ca   : > { %v599_v32 = vsel %vm597_vm3, %v1753_v31, -1e+30  ;;  %v585_v33 = vpop.f32.mrb[1].mxu1 }
 0x2cb   : > { %v603_v34 = vsel %vm510_vm2, %v599_v32, -inf  ;;  %v598_v39 = vsel %vm596_vm5, %v585_v33, -1e+30 }
 0x2cc   : > { %604 = vmax.xlane.f32.xlu1 %v603_v34  ;;  %v600_v43 = vsel %vm510_vm2, %v598_v39, -inf }
 0x2cd   : > { %v1763_v35 = vpop.f32.mrb[2].mxu0 }
 0x2ce   : > { %v800_v36 = vsel %vm798_vm4, %v1763_v35, -1e+30  ;;  %v787_v37 = vpop.f32.mrb[3].mxu0 }
 0x2cf   : > { %v804_v38 = vsel %vm510_vm2, %v800_v36, -inf }
 0x2d0   : > { %805 = vmax.xlane.f32.xlu0 %v804_v38 }
 0x2d1   : > { %v1773_v40 = vpop.f32.mrb[4].mxu0 }
 0x2d2   : > { %v1001_v41 = vpop.f32.mrb[5].mxu0  ;;  %v1011_v44 = vsel %vm597_vm3, %v1773_v40, -1e+30 }
 0x2d3   : > { %v1010_v42 = vsel %vm596_vm5, %v1001_v41, -1e+30  ;;  %v1015_v48 = vsel %vm510_vm2, %v1011_v44, -inf  ;;  %v1343_v41 = vld [vmem:[%s353_s20] sm:$0xff] }
 0x2d4   : > { %601 = vmax.xlane.f32.xlu0 %v600_v43  ;;  %v1012_v45 = vsel %vm510_vm2, %v1010_v42, -inf }
 0x2d5   : > { %v1783_v46 = vpop.f32.mrb[6].mxu0  ;;  %1013 = vmax.xlane.f32.xlu1 %v1012_v45 }
 0x2d6   : > { %v1198_v47 = vpop.f32.mrb[7].mxu0  ;;  %v1208_v49 = vsel %vm798_vm4, %v1783_v46, -1e+30 }
 0x2d7   : > { %v1212_v50 = vsel %vm510_vm2, %v1208_v49, -inf }
 0x2d8   : > { %1016 = vmax.xlane.f32.xlu0 %v1015_v48 }
 0x2dc   : > { %1213 = vmax.xlane.f32.xlu0 %v1212_v50 }
 0x2e6   : > { %1042 = vrot.lane.b32.xlu1 %v2546_v12, %s2204_s22 }
 0x2ea   : > { %1241 = vrot.lane.b32.xlu1 %v2551_v14, %s2204_s22 }
 0x2f2   : > { %833 = vrot.lane.b32.xlu0 %v2551_v14, %s2203_s21 }
 0x359   : > { %v605_v52 = vpop.xlane.xlu1 %604 }
 0x35a   : > { %v2589_v53 = vmax.f32 %v605_v52, -1e+30 }
 0x35c   : > { %v615_v56 = vsub.f32 %v599_v32, %v2589_v53 }
 0x35d   : > { %v806_v54 = vpop.xlane.xlu0 %805 }
 0x35e   : > { %v2592_v55 = vmax.f32 %v2589_v53, %v806_v54  ;;  %v618_v61 = vmul.f32 1.442695, %v615_v56 }
 0x360   : > { %v810_v57 = vsub.f32 %v2589_v53, %v2592_v55  ;;  %v816_v63 = vsub.f32 %v800_v36, %v2592_v55  ;;  %1931 = vpow2.f32 %v618_v61 }
 0x361   : > { %v602_v58 = vpop.xlane.xlu0 %601 }
 0x362   : > { %v2597_v59 = vmax.f32 %v602_v58, -1e+30  ;;  %v1014_v60 = vpop.xlane.xlu1 %1013  ;;  %v819_v12 = vmul.f32 1.442695, %v816_v63  ;;  %v813_v63 = vmul.f32 1.442695, %v810_v57 }
 0x363   : > { %v2599_v62 = vmax.f32 %v1014_v60, -1e+30 }
 0x364   : > { %v614_v0 = vsub.f32 %v598_v39, %v2597_v59  ;;  %v2604_v1 = vmax.f32 %v2597_v59, %v803_v51  ;;  %v608_v48 = vsub.f32 -1e+30, %v2597_v59  ;;  %v609_v51 = vsub.f32 -1e+30, %v2589_v53 }
 0x365   : > { %v1026_v2 = vsub.f32 %v1010_v42, %v2599_v62  ;;  %v2608_v3 = vmax.f32 %v2599_v62, %v1211_v24  ;;  %v1017_v4 = vpop.xlane.xlu0 %1016  ;;  %v1344_v42 = vld [vmem:[%s353_s20 + $0x8] sm:$0xff] }
 0x366   : > { %v616_v5 = vmul.f32 1.442695, %v614_v0  ;;  %v809_v6 = vsub.f32 %v2597_v59, %v2604_v1  ;;  %v815_v7 = vsub.f32 -1e+30, %v2604_v1  ;;  %v2613_v8 = vmax.f32 %v1017_v4, -1e+30  ;;  %v1043_v26 = vpop.permute.xlu1 %1042 }
 0x367   : > { %v1028_v9 = vmul.f32 1.442695, %v1026_v2  ;;  %v1217_v10 = vsub.f32 %v2599_v62, %v2608_v3  ;;  %v1223_v11 = vsub.f32 -1e+30, %v2608_v3  ;;  %v1804_v43 = vpack.c.bf16 %v1344_v42, %v1343_v41 }
 0x368   : > { %1933 = vpow2.f32 %v616_v5  ;;  %v817_v13 = vmul.f32 1.442695, %v815_v7  ;;  %v1027_v14 = vsub.f32 %v1011_v44, %v2613_v8  ;;  %v1020_v44 = vsub.f32 -1e+30, %v2599_v62 }
 0x369   : > { %1935 = vpow2.f32 %v1028_v9  ;;  %v1214_v15 = vpop.xlane.xlu0 %1213  ;;  %v1225_v16 = vmul.f32 1.442695, %v1223_v11  ;;  %1805 = vmatprep.subr.bf16.mxu0 %v1804_v43  ;;  %v1021_v46 = vsub.f32 -1e+30, %v2613_v8  ;;  %v610_v50 = vmul.f32 1.442695, %v608_v48 }
 0x36a   : > { %v1030_v17 = vmul.f32 1.442695, %v1027_v14  ;;  %v2620_v18 = vmax.f32 %v2613_v8, %v1214_v15  ;;  %1937 = vpow2.f32 %v817_v13  ;;  %v1932_v23 = vpop.eup %1931  ;;  %v1242_v34 = vpop.permute.xlu1 %1241  ;;  %1807 = vmatpush3.bf16.msra.mxu0 %v1804_v43  ;;  %v1022_v45 = vmul.f32 1.442695, %v1020_v44 }
 0x36b   : > { %1939 = vpow2.f32 %v819_v12  ;;  %v625_v39 = vsel %vm510_vm2, %v1932_v23, 0.0  ;;  %v1024_v47 = vmul.f32 1.442695, %v1021_v46  ;;  %v612_v54 = vmul.f32 1.442695, %v609_v51 }
 0x36c   : > { %v1218_v19 = vsub.f32 %v2613_v8, %v2620_v18  ;;  %v1224_v20 = vsub.f32 %v1208_v49, %v2620_v18  ;;  %1941 = vpow2.f32 %v1030_v17  ;;  %v1219_v49 = vmul.f32 1.442695, %v1217_v10 }
 0x36d   : > { %v834_v21 = vpop.permute.xlu0 %833  ;;  %1943 = vpow2.f32 %v1225_v16  ;;  %v811_v58 = vmul.f32 1.442695, %v809_v6 }
 0x36e   : > { %v1227_v22 = vmul.f32 1.442695, %v1224_v20  ;;  %1764 = vmatprep.subr.mxu1 %v834_v21  ;;  %v1221_v52 = vmul.f32 1.442695, %v1218_v19 }
 0x370   : > { %1945 = vpow2.f32 %v1227_v22 }
 0x371   : > { %1947 = vpow2.f32 %v1022_v45 }
 0x372   : > { %v1934_v24 = vpop.eup %1933  ;;  %1949 = vpow2.f32 %v1024_v47 }
 0x373   : > { %v1936_v25 = vpop.eup %1935  ;;  %1756 = vmatprep.mubr.msk.f32.mxu1 %vm510_vm2, %v1934_v24  ;;  %v622_v36 = vsel %vm510_vm2, %v1934_v24, 0.0  ;;  %1951 = vpow2.f32 %v1219_v49 }
 0x374   : > { %1757 = vmatmul.mubr.msk.f32.vlgmr.msra.gmra.mrb[2].mxu1 %vm510_vm2, %v1932_v23  ;;  %v1034_v27 = vsel %vm510_vm2, %v1936_v25, 0.0  ;;  %v1938_v28 = vpop.eup %1937  ;;  %1953 = vpow2.f32 %v610_v50 }
 0x375   : > { %1765 = vmatpush3.msra.mxu1 %v834_v21  ;;  %1035 = vadd.xlane.f32.xlu0 %v1034_v27  ;;  %v1940_v29 = vpop.eup %1939  ;;  %v823_v38 = vsel %vm510_vm2, %v1938_v28, 0.0  ;;  %1955 = vpow2.f32 %v1221_v52 }
 0x376   : > { %1766 = vmatprep.mubr.msk.f32.mxu1 %vm510_vm2, %v1938_v28  ;;  %1774 = vmatprep.subr.mxu1 %v1043_v26  ;;  %v1942_v30 = vpop.eup %1941  ;;  %v826_v40 = vsel %vm510_vm2, %v1940_v29, 0.0  ;;  %1957 = vpow2.f32 %v612_v54 }
 0x377   : > { %v1944_v31 = vpop.eup %1943  ;;  %v1037_v32 = vsel %vm510_vm2, %v1942_v30, 0.0  ;;  %1959 = vpow2.f32 %v811_v58 }
 0x378   : > { %1767 = vmatmul.mubr.msk.f32.vlgmr.msra.gmra.mrb[4].mxu1 %vm510_vm2, %v1940_v29  ;;  %1038 = vadd.xlane.f32.xlu1 %v1037_v32  ;;  %v1231_v33 = vsel %vm510_vm2, %v1944_v31, 0.0  ;;  %1961 = vpow2.f32 %v813_v63 }
 0x379   : > { %1775 = vmatpush3.msra.mxu1 %v1043_v26  ;;  %1232 = vadd.xlane.f32.xlu0 %v1231_v33 }
 0x37a   : > { %1776 = vmatprep.mubr.msk.f32.mxu1 %vm510_vm2, %v1936_v25  ;;  %v1946_v35 = vpop.eup %1945  ;;  %1784 = vmatprep.subr.mxu1 %v1242_v34 }
 0x37b   : > { %v1234_v37 = vsel %vm510_vm2, %v1946_v35, 0.0  ;;  %v1948_v56 = vpop.eup %1947 }
 0x37c   : > { %1777 = vmatmul.mubr.msk.f32.vlgmr.msra.gmra.mrb[6].mxu1 %vm510_vm2, %v1942_v30  ;;  %623 = vadd.xlane.f32.xlu1 %v622_v36  ;;  %v1032_v60 = vmul.f32 0.0, %v1948_v56  ;;  %v1950_v61 = vpop.eup %1949 }
 0x37d   : > { %1785 = vmatpush3.msra.mxu1 %v1242_v34  ;;  %1235 = vadd.xlane.f32.xlu0 %v1234_v37  ;;  %v1952_v2 = vpop.eup %1951  ;;  %v1033_v3 = vmul.f32 0.0, %v1950_v61  ;;  %v1341_v61 = vld [vmem:[#allocation2] sm:$0xff] }
 0x37e   : > { %1786 = vmatprep.mubr.msk.f32.mxu1 %vm510_vm2, %v1944_v31  ;;  %v1954_v5 = vpop.eup %1953 }
 0x37f   : > { %v1956_v1 = vpop.eup %1955  ;;  %v620_v6 = vmul.f32 0.0, %v1954_v5  ;;  %v1446_v5 = vld [vmem:[%s2519_s6] sm:$0xff] (!%p1691_p1) }
 0x380   : > { %1787 = vmatmul.mubr.msk.f32.vlgmr.msra.gmra.mrb[8].mxu1 %vm510_vm2, %v1946_v35  ;;  %824 = vadd.xlane.f32.xlu1 %v823_v38  ;;  %v1958_v11 = vpop.eup %1957 }
 0x381   : > { %626 = vadd.xlane.f32.xlu0 %v625_v39  ;;  %v1960_v14 = vpop.eup %1959  ;;  %v621_v53 = vmul.f32 0.0, %v1958_v11 }
 0x382   : > { %v1962_v16 = vpop.eup %1961 }
 0x385   : > { %827 = vadd.xlane.f32.xlu0 %v826_v40 }
 0x402   : > { %v1036_v62 = vpop.xlane.xlu0 %1035 }
 0x403   : > { %v1040_v0 = vadd.f32 %v1036_v62, %v1032_v60 }
 0x405   : > { %v1229_v4 = vmul.f32 %v1952_v2, %v1040_v0  ;;  %v1039_v7 = vpop.xlane.xlu1 %1038 }
 0x406   : > { %v1041_v8 = vadd.f32 %v1039_v7, %v1033_v3  ;;  %v1233_v59 = vpop.xlane.xlu0 %1232 }
 0x407   : > { %v1237_v24 = vadd.f32 %v1233_v59, %v1229_v4  ;;  %v1692_v4 = vld [vmem:[%s2818_s15] ss:$0 sm:$0xff] (!%p1691_p1)  ;;  %v1447_v59 = vld [vmem:[%s2519_s6 + $0x8] sm:$0xff] (!%p1691_p1) }
 0x408   : > { %v1230_v9 = vmul.f32 %v1956_v1, %v1041_v8 }
 0x409   : > { %v624_v10 = vpop.xlane.xlu1 %623 }
 0x40a   : > { %v628_v12 = vadd.f32 %v624_v10, %v620_v6  ;;  %v1236_v13 = vpop.xlane.xlu0 %1235 }
 0x40b   : > { %v1238_v22 = vadd.f32 %v1236_v13, %v1230_v9 }
 0x40c   : > { %v821_v15 = vmul.f32 %v1960_v14, %v628_v12 }
 0x40d   : > { %v825_v19 = vpop.xlane.xlu1 %824 }
 0x40e   : > { %v627_v55 = vpop.xlane.xlu0 %626  ;;  %v829_v21 = vadd.f32 %v825_v19, %v821_v15 }
 0x40f   : > { %v629_v57 = vadd.f32 %v627_v55, %v621_v53 }
 0x411   : > { %v822_v17 = vmul.f32 %v1962_v16, %v629_v57 }
 0x412   : > { %v828_v18 = vpop.xlane.xlu0 %827 }
 0x413   : > { %v830_v20 = vadd.f32 %v828_v18, %v822_v17 }
 0x415   : > { %1963 = vrcp.f32 %v830_v20 }
 0x416   : > { %1965 = vrcp.f32 %v829_v21 }
 0x417   : > { %1967 = vrcp.f32 %v1238_v22 }
 0x418   : > { %1969 = vrcp.f32 %v1237_v24 }
 0x41f   : > { %v1964_v33 = vpop.eup %1963 }
 0x420   : > { %v1966_v35 = vpop.eup %1965 }
 0x421   : > { %v1968_v47 = vpop.eup %1967 }
 0x422   : > { %v1970_v49 = vpop.eup %1969 }
 0x447   : > { %v1758_v23 = vpop.f32.mrb[2].mxu1 }
 0x448   : > { %v715_v25 = vadd.f32 %v1758_v23, %v621_v53  ;;  %v705_v26 = vpop.f32.mrb[3].mxu1 }
 0x449   : > { %v714_v27 = vadd.f32 %v705_v26, %v620_v6  ;;  %v1693_v26 = vld [vmem:[%s2819_s7] ss:$0 sm:$0xff] (!%p1691_p1) }
 0x44a   : > { %v832_v28 = vmul.f32 %v1962_v16, %v715_v25 }
 0x44b   : > { %v1768_v29 = vpop.f32.mrb[4].mxu1  ;;  %v831_v30 = vmul.f32 %v1960_v14, %v714_v27 }
 0x44c   : > { %v918_v31 = vadd.f32 %v1768_v29, %v832_v28  ;;  %v908_v32 = vpop.f32.mrb[5].mxu1  ;;  %v1694_v28 = vld [vmem:[%s2820_s27] ss:$0 sm:$0xff] (!%p1691_p1) }
 0x44d   : > { %v917_v34 = vadd.f32 %v908_v32, %v831_v30 }
 0x44e   : > { %v922_v36 = vmul.f32 %v1964_v33, %v918_v31 }
 0x44f   : > { %v921_v37 = vmul.f32 %v1966_v35, %v917_v34  ;;  %v1778_v38 = vpop.f32.mrb[6].mxu1 }
 0x450   : > { %v1127_v39 = vadd.f32 %v1778_v38, %v1033_v3  ;;  %v1117_v40 = vpop.f32.mrb[7].mxu1 }
 0x451   : > { %v1126_v41 = vadd.f32 %v1117_v40, %v1032_v60  ;;  %v1342_v60 = vld [vmem:[#allocation2 + $0x8] sm:$0xff] }
 0x452   : > { %v1240_v42 = vmul.f32 %v1956_v1, %v1127_v39 }
 0x453   : > { %v1788_v43 = vpop.f32.mrb[8].mxu1  ;;  %v1239_v44 = vmul.f32 %v1952_v2, %v1126_v41 }
 0x454   : > { %v1326_v45 = vadd.f32 %v1788_v43, %v1240_v42  ;;  %v1316_v46 = vpop.f32.mrb[9].mxu1 }
 0x455   : > { %v1325_v48 = vadd.f32 %v1316_v46, %v1239_v44 }
 0x456   : > { %v1330_v50 = vmul.f32 %v1968_v47, %v1326_v45 }
 0x457   : > { %v1329_v51 = vmul.f32 %v1970_v49, %v1325_v48 }
 0x458   : > { %1335 = vrot.lane.b32.xlu0 %v1330_v50, %s2205_s10 }
 0x459   : > { %1333 = vrot.lane.b32.xlu1 %v1329_v51, %s2205_s10 }
 0x4ca   : > { %v1336_v52 = vpop.permute.xlu0 %1335 }
 0x4cb   : > { %v1334_v54 = vpop.permute.xlu1 %1333  ;;  %v1340_v58 = vsel %vm510_vm2, %v922_v36, %v1336_v52 }
 0x4cc   : > { %v1339_v56 = vsel %vm510_vm2, %v921_v37, %v1334_v54 }
 0x4cd   : > { %1793 = vmatprep.mubr.msk.f32.mxu0 %vm1345_vm6, %v1339_v56 }
 0x4ce   : > { %1794 = vmatmul.mubr.msk.f32.vlgmr.msra.gmra.mrb[8].mxu0 %vm1345_vm6, %v1340_v58 }
 0x59f   : > { %1434 = sbr.rel (%p1691_p1) target bundleno = 1775 (0x6ef), region = 68 }
 0x5a1   : > { %v1795_v62 = vpop.f32.mrb[8].mxu0 }
 0x5a2   : > { %v1428_v63 = vadd.f32 %v1795_v62, %v1342_v60  ;;  %v1418_v0 = vpop.f32.mrb[9].mxu0 }
 0x5a3   : > { %v1427_v2 = vadd.f32 %v1418_v0, %v1341_v61 }
 0x5a4   : > { %1430 = vst.msk [vmem:[#allocation2 + $0x8] sm:$0xff] %vm420_vm1, %v1428_v63 }
 0x5a5   : > { %1429 = vst.msk [vmem:[#allocation2] sm:$0xff] %vm420_vm1, %v1427_v2 }
 0x5ab   : > { %v1436_v8 = vld [vmem:[#allocation2 + $0x8] sm:$0xff] }
 0x5ac   : > { %v1435_v3 = vld [vmem:[#allocation2] sm:$0xff]  ;;  %v1445_v1 = vadd.f32 %v1692_v4, %v1436_v8 }
 0x5ad   : > { %v1444_v7 = vadd.f32 %v1692_v4, %v1435_v3 }
 0x5ae   : > { %v1449_v9 = vadd.f32 %v1447_v59, %v1445_v1 }
 0x5af   : > { %v1448_v6 = vadd.f32 %v1446_v5, %v1444_v7 }
 0x5b0   : > { %v1453_v11 = vsel %vm420_vm1, %v1449_v9, 0.0 }
 0x5b1   : > { %v1450_v10 = vsel %vm420_vm1, %v1448_v6, 0.0 }
 0x5b2   : > { %1451 = vadd.xlane.f32.xlu0 %v1450_v10 }
 0x5b6   : > { %1454 = vadd.xlane.f32.xlu0 %v1453_v11 }
 0x63f   : > { %v1452_v12 = vpop.xlane.xlu0 %1451 }
 0x640   : > { %v1457_v13 = vmul.f32 0.03125, %v1452_v12 }
 0x642   : > { %v1459_v14 = vsub.f32 %v1448_v6, %v1457_v13 }
 0x643   : > { %v1455_v15 = vpop.xlane.xlu0 %1454 }
 0x644   : > { %v1458_v53 = vmul.f32 0.03125, %v1455_v15  ;;  %v1461_v55 = vmul.f32 %v1459_v14, %v1459_v14 }
 0x646   : > { %v1460_v57 = vsub.f32 %v1449_v9, %v1458_v53  ;;  %v1463_v16 = vsel %vm420_vm1, %v1461_v55, 0.0 }
 0x647   : > { %1464 = vadd.xlane.f32.xlu1 %v1463_v16 }
 0x648   : > { %v1462_v17 = vmul.f32 %v1460_v57, %v1460_v57 }
 0x64a   : > { %v1466_v18 = vsel %vm420_vm1, %v1462_v17, 0.0 }
 0x64b   : > { %1467 = vadd.xlane.f32.xlu1 %v1466_v18 }
 0x6d4   : > { %v1465_v19 = vpop.xlane.xlu1 %1464 }
 0x6d5   : > { %v1469_v20 = vmul.f32 0.03125, %v1465_v19 }
 0x6d7   : > { %v1471_v21 = vadd.f32 1e-05, %v1469_v20 }
 0x6d8   : > { %v1468_v22 = vpop.xlane.xlu1 %1467 }
 0x6d9   : > { %1971 = vrsqrt.f32 %v1471_v21  ;;  %v1470_v23 = vmul.f32 0.03125, %v1468_v22 }
 0x6db   : > { %v1472_v24 = vadd.f32 1e-05, %v1470_v23 }
 0x6dd   : > { %1973 = vrsqrt.f32 %v1472_v24 }
 0x6e3   : > { %v1972_v25 = vpop.eup %1971 }
 0x6e4   : > { %v1475_v27 = vmul.f32 %v1972_v25, %v1459_v14 }
 0x6e6   : > { %v1484_v29 = vmul.f32 %v1693_v26, %v1475_v27 }
 0x6e7   : > { %v1974_v30 = vpop.eup %1973 }
 0x6e8   : > { %v1493_v31 = vadd.f32 %v1694_v28, %v1484_v29  ;;  %v1476_v32 = vmul.f32 %v1974_v30, %v1460_v57 }
 0x6ea   : > { %1495 = vst.msk [vmem:[%s2539_s13] sm:$0xff] %vm420_vm1, %v1493_v31  ;;  %v1485_v33 = vmul.f32 %v1693_v26, %v1476_v32 }
 0x6ec   : > { %v1494_v34 = vadd.f32 %v1694_v28, %v1485_v33 }
 0x6ee   : > { %1496 = vst.msk [vmem:[%s2539_s13 + $0x8] sm:$0xff] %vm420_vm1, %v1494_v34 }
 0x6ef PF: > { %s2821_s29 = sld [smem:[#allocation16_spill]]  ;;  %s2822_s12 = sld [smem:[#allocation27_spill]] }
 0x6f0   : > { %s1511_s17 = sshll.u32 %s2539_s13, 4  ;;  %s1498_s23 = scalar_lea.sflag [#allocation5], %s2515_s26  ;;  %s2691_s17 = int_to_ptr.vmem [resolvable:$true] %s1511_s17 }
 0x6f1   : > { %s2065_s4 = scalar_lea.vmem %s2691_s17, 256  ;;  %p2823_p2 = scmp.ne.s32.totalorder %s2806_s14, 0 }
 0x6f2   : > { %p2066_p3 = scmp.ne.s32.totalorder %s2691_s17, %s2065_s4  ;;  %s2206_s21 = smov [#allocation9]  }
 0x6f3   : > { %s2069_s22 = sshll.u32 %s2206_s21, 4  ;;  %s2070_s22 = int_to_ptr.vmem [resolvable:$false] %s2069_s22 }
 0x6f4   : > { %p2067_p12 = pnand %p2066_p3, %p2823_p2  ;;  %s2071_s1 = scalar_lea.vmem %s2070_s22, 512 }
 0x6f5   : > { %s1703_s18 = sshll.u32 %s2821_s29, 8  ;;  %p2072_p7 = scmp.lt.s32.totalorder %s2691_s17, %s2070_s22 }
 0x6f6   : > { %s2688_s20 = scalar_lea.hbm %s2822_s12, %s1703_s18  ;;  %p2068_p0 = pneg %p2067_p12 }
 0x6f7   : > { %p2073_p8 = scmp.lt.s32.totalorder %s2071_s1, %s2065_s4 }
 0x6f9   : > { %p2074_p11 = por %p2073_p8, %p2072_p7 }
 0x6fb   : > { %p2075_p5 = pnand %p2074_p11, %p2068_p0 }
 0x6fd   : > { %2078 = shalt.err (!%p2075_p5)
}
 0x6fe   : > { %s2079_s13 = scalar_lea.hbm %s2688_s20, 256  ;;  %s2083_s30 = scalar_lea.hbm %s2822_s12, 512 }
 0x6ff   : > { %p2080_p13 = scmp.ne.s32.totalorder %s2688_s20, %s2079_s13  ;;  %p2084_p6 = scmp.lt.u32.totalorder %s2688_s20, %s2822_s12 }
 0x700   : > { %p2085_p4 = scmp.lt.u32.totalorder %s2083_s30, %s2079_s13  ;;  %p2087_p3 = scmp.lt.u32.totalorder %s2079_s13, %s2688_s20 }
 0x701   : > { %p2081_p10 = pnand %p2080_p13, %p2823_p2 }
 0x702   : > { %p2086_p1 = por %p2085_p4, %p2084_p6 }
 0x703   : > { %p2082_p9 = pneg %p2081_p10 }
 0x704   : > { %p2088_p12 = por %p2087_p3, %p2086_p1 }
 0x706   : > { %p2089_p0 = pnand %p2088_p12, %p2082_p9 }
 0x708   : > { %2092 = shalt.err (!%p2089_p0)
}
 0x709   : > { %s2207_s16 = smov 128  }
 0x70a   : > { %1814 = dma.vmem_to_hbm [thread:$0]  (%p2823_p2), %s2691_s17, 256, %s2688_s20, %s1498_s23, %s2207_s16, %s2207_s16, %s2205_s10  }
 0x70b PF: > { %s2824_s19 = sld [smem:[#allocation14_spill]]  ;;  %p1831_p7 = scmp.ge.s32.totalorder %s2191_s11, 2 }
 0x70c   : > { %p2825_p8 = scmp.ne.s32.totalorder %s2807_s8, 0 }
 0x70e   : > { %p1827_p11 = pnand %p1831_p7, %p2825_p8 }
 0x711   : > { %s1526_s27 = sand.u32 1, %s2824_s19  }
 0x712   : > { %s1527_s29 = scalar_lea.sflag [#allocation5], %s1526_s27 }
 0x713   : > { %2146 = dma.done.wait (!%p1827_p11), %s1527_s29, 256  }
 0x714   : > { %2148 = vsyncadd (!%p1827_p11), %s1527_s29, 4294967040  ;;  %s26_s11 = sadd.s32 1, %s2191_s11   ;;  %s2826_s14 = sld [smem:[#allocation13_spill]] }
 0x715   : > { %p23_p5 = scmp.ge.s32.totalorder %s26_s11, 6   ;;  %s2827_s26 = sld [smem:[#allocation20_spill]] }
 0x716   : > { %s2828_s18 = sld [smem:[#allocation15_spill]]  ;;  %s2829_s29 = sld [smem:[#allocation22_spill]] }
 0x717   : > { %s2830_s30 = sld [smem:[#allocation17_spill]]  ;;  %s2831_s8 = sld [smem:[#allocation18_spill]] }
 0x718   : > { %s2832_s9 = sld [smem:[#allocation19_spill]]  ;;  %s2833_s10 = sld [smem:[#allocation21_spill]] }
 0x719   : > { %s2834_s24 = smov %s2155_s25  ;;  %s2836_s27 = smov %s2167_s28 }
 0x71a   : > { %s2835_s25 = smov %s2826_s14  ;;  %25 = sbr.rel (!%p23_p5) target bundleno = 17 (0x11), region = 128 }
 0x71c   : > { %s2837_s28 = smov %s2828_s18 }
 0x721   :  { %1532 = vsyncpa [#allocation4], 1 }
 0x722   :  { %1534 = vsyncpa [#allocation4 + $0x1], 1 }
 0x723   :  { %1535 = vsyncpa [#allocation7], 1 }
 0x724   :  { %1537 = vsyncpa [#allocation7 + $0x1], 1 }
 0x725   :  { %1538 = vsyncpa [#allocation5], 1 }
 0x726   :  { %1540 = vsyncpa [#allocation5 + $0x1], 1 }

</bundles_post_ra>
